<compile_context>
chip_gen: v7x
topology: tpu7x:2x2x1
jax: 0.10.0
libtpu: 0.0.40
codegen_flags: <defaults>
</compile_context>

<pallas_src>
import functools

import jax
import jax.numpy as jnp
from jax import lax
from jax.experimental import pallas as pl
from jax.experimental.pallas import tpu as pltpu


# ----------------------------------------------------------------------------
# Fused preNet forward kernel
# ----------------------------------------------------------------------------
def _prenet_kernel(xs_ref, xt_ref, wconv_ref, bconv_ref, w1_ref, b1_ref,
                   w2_ref, b2_ref, out_ref, flat_ref, *, B, C, H, W, O):
    HW = H * W
    PAD = W + 1                               # zero pad on the flattened lane axis

    x_vals = (xs_ref[...], xt_ref[...])       # each [B, C, HW + 2*PAD]
    w_conv = wconv_ref[...]                   # [2, 9, O, C]  (branch, tap, o, c)
    b_conv = bconv_ref[...]                   # [2, O, 1]

    # w-coordinate (column) of every output pixel, for masking horizontal taps
    # at the left/right image border (vertical border is handled by the pad).
    w_idx = lax.broadcasted_iota(jnp.int32, (B, C, HW), 2) % W

    for s in range(2):                        # 0 = seq branch, 1 = struct branch
        x_pad = x_vals[s]                     # [B, C, HW + 2*PAD]
        accs = [jnp.zeros((O, HW), jnp.float32) for _ in range(B)]
        for kh in range(3):
            for kw in range(3):
                dy, dx = kh - 1, kw - 1
                start = PAD + dy * W + dx
                x_tap = x_pad[:, :, start:start + HW]          # [B, C, HW]
                if dx == -1:                                   # left border -> 0
                    x_tap = jnp.where(w_idx >= 1, x_tap, 0.0)
                elif dx == 1:                                  # right border -> 0
                    x_tap = jnp.where(w_idx <= W - 2, x_tap, 0.0)
                w_tap = w_conv[s, 3 * kh + kw]                 # [O, C]
                for b in range(B):
                    accs[b] = accs[b] + jnp.dot(
                        w_tap, x_tap[b], preferred_element_type=jnp.float32)
        for b in range(B):
            conv = jnp.maximum(accs[b] + b_conv[s], 0.0)       # [O, HW] lane-dense
            # flatten(1,-1) + cat: row o of branch s -> lane offset s*O*HW + o*HW
            # (exact PyTorch ordering).  Aligned, unmasked 256-lane stores.
            for o in range(O):
                col = s * O * HW + o * HW
                flat_ref[b:b + 1, col:col + HW] = conv[o:o + 1, :]

    # fcnn: Linear(4096->32)+ReLU, Linear(32->2); weights stay in PyTorch
    # [out, in] layout (lane-dense on K), contracted trans_b on the MXU.
    x_flat = flat_ref[...]                                     # [B, 4096]
    h1 = lax.dot_general(x_flat, w1_ref[...], (((1,), (1,)), ((), ())),
                         preferred_element_type=jnp.float32)   # [B, 32]
    h1 = jnp.maximum(h1 + b1_ref[...], 0.0)
    out = lax.dot_general(h1, w2_ref[...], (((1,), (1,)), ((), ())),
                          preferred_element_type=jnp.float32)  # [B, 2]
    out_ref[...] = (out + b2_ref[...]).astype(out_ref.dtype)


def _full_spec(arr):
    n = arr.ndim
    return pl.BlockSpec(arr.shape, lambda: (0,) * n)


def prenet_forward(params, x_seq, x_struct):
    """Fused preNet forward. x_*: [B, C, H, W] float32 -> [B, n_out] float32."""
    B, C, H, W = x_seq.shape
    HW, PAD = H * W, W + 1
    O = params["w_conv"].shape[2]
    n_out = params["fc2_w"].shape[0]

    def prep(x):   # free contiguous reshape + tiny zero pad; taps = static lane slices
        return jnp.pad(x.reshape(B, C, HW).astype(jnp.float32),
                       ((0, 0), (0, 0), (PAD, PAD)))

    args = (prep(x_seq), prep(x_struct), params["w_conv"], params["b_conv"],
            params["fc1_w"], params["fc1_b"], params["fc2_w"], params["fc2_b"])

    kernel = functools.partial(_prenet_kernel, B=B, C=C, H=H, W=W, O=O)
    return pl.pallas_call(
        kernel,
        out_shape=jax.ShapeDtypeStruct((B, n_out), jnp.float32),
        in_specs=[_full_spec(a) for a in args],
        out_specs=pl.BlockSpec((B, n_out), lambda: (0, 0)),
        scratch_shapes=[pltpu.VMEM((B, 2 * O * HW), jnp.float32)],
    )(*args)


# ----------------------------------------------------------------------------
# Parameters: PyTorch layouts + one-time pack to kernel layout
# ----------------------------------------------------------------------------
def _kaiming_uniform(key, shape, fan_in):
    bound = jnp.sqrt(2.0) * jnp.sqrt(3.0 / fan_in)     # relu gain
    return jax.random.uniform(key, shape, jnp.float32, -bound, bound)


def _bias_uniform(key, shape, fan_in):
    bound = 1.0 / jnp.sqrt(fan_in)                     # PyTorch default bias init
    return jax.random.uniform(key, shape, jnp.float32, -bound, bound)


def init_torch_params(key, c_in=4, c_conv=8, h=16, w=16, hidden=32, n_out=2, k=3):
    """Parameters in native PyTorch layouts (Conv2d OIHW, Linear [out, in])."""
    ks = jax.random.split(key, 8)
    flat = 2 * c_conv * h * w
    fan_conv = c_in * k * k
    return {
        "seq_w": _kaiming_uniform(ks[0], (c_conv, c_in, k, k), fan_conv),
        "seq_b": _bias_uniform(ks[1], (c_conv,), fan_conv),
        "str_w": _kaiming_uniform(ks[2], (c_conv, c_in, k, k), fan_conv),
        "str_b": _bias_uniform(ks[3], (c_conv,), fan_conv),
        "fc1_w": _kaiming_uniform(ks[4], (hidden, flat), flat),
        "fc1_b": _bias_uniform(ks[5], (hidden,), flat),
        "fc2_w": _kaiming_uniform(ks[6], (n_out, hidden), hidden),
        "fc2_b": _bias_uniform(ks[7], (n_out,), hidden),
    }


def pack_params(tp):
    """One-time relayout of the (tiny) conv weights to per-tap [2,9,O,C] form.
    fc1/fc2 weights stay in PyTorch [out, in] layout (already lane-dense on K)."""
    O, C, KH, KW = tp["seq_w"].shape

    def taps(w):  # [O, C, KH, KW] -> [KH*KW, O, C], tap index = kh*KW + kw
        return w.transpose(2, 3, 0, 1).reshape(KH * KW, O, C)

    return {
        "w_conv": jnp.stack([taps(tp["seq_w"]), taps(tp["str_w"])], axis=0),
        "b_conv": jnp.stack([tp["seq_b"], tp["str_b"]], axis=0).reshape(2, O, 1),
        "fc1_w": tp["fc1_w"],
        "fc1_b": tp["fc1_b"].reshape(1, -1),
        "fc2_w": tp["fc2_w"],
        "fc2_b": tp["fc2_b"].reshape(1, -1),
    }


# ----------------------------------------------------------------------------
# Pure-JAX reference (mirrors the PyTorch module) for validation
# ----------------------------------------------------------------------------
def prenet_reference(tp, x_seq, x_struct):
    hp = lax.Precision.HIGHEST

    def conv_relu(x, w, b):
        y = lax.conv_general_dilated(x, w, (1, 1), "SAME",
                                     dimension_numbers=("NCHW", "OIHW", "NCHW"),
                                     precision=hp)
        return jax.nn.relu(y + b[None, :, None, None])

    B = x_seq.shape[0]
    a = conv_relu(x_seq, tp["seq_w"], tp["seq_b"]).reshape(B, -1)
    c = conv_relu(x_struct, tp["str_w"], tp["str_b"]).reshape(B, -1)
    h = jnp.concatenate([a, c], axis=1)
    h1 = jax.nn.relu(jnp.dot(h, tp["fc1_w"].T, precision=hp) + tp["fc1_b"])
    return jnp.dot(h1, tp["fc2_w"].T, precision=hp) + tp["fc2_b"]


if __name__ == "__main__":
    key = jax.random.PRNGKey(0)
    kp, kx1, kx2 = jax.random.split(key, 3)

    B, C, H, W = 2, 4, 16, 16
    torch_params = init_torch_params(kp, c_in=C, c_conv=8, h=H, w=W,
                                     hidden=32, n_out=2)
    params = pack_params(torch_params)

    x_seq = jax.random.normal(kx1, (B, C, H, W), jnp.float32)
    x_struct = jax.random.normal(kx2, (B, C, H, W), jnp.float32)

    fwd = jax.jit(prenet_forward)
    out = fwd(params, x_seq, x_struct)
    jax.block_until_ready(out)
    assert out.shape == (B, 2) and out.dtype == jnp.float32

    ref = prenet_reference(torch_params, x_seq, x_struct)
    assert jnp.allclose(out, ref, atol=2e-2, rtol=2e-2), (out, ref)

    print("KERNEL_OK")
</pallas_src>

<mosaic_0001>
module attributes {stable_mosaic.version = 11 : i64} {
  func.func @_prenet_kernel(%arg0: memref<2x4x290xf32, #tpu.memory_space<vmem>>, %arg1: memref<2x4x290xf32, #tpu.memory_space<vmem>>, %arg2: memref<2x9x8x4xf32, #tpu.memory_space<vmem>>, %arg3: memref<2x8x1xf32, #tpu.memory_space<vmem>>, %arg4: memref<32x4096xf32, #tpu.memory_space<vmem>>, %arg5: memref<1x32xf32, #tpu.memory_space<vmem>>, %arg6: memref<2x32xf32, #tpu.memory_space<vmem>>, %arg7: memref<1x2xf32, #tpu.memory_space<vmem>>, %arg8: memref<2x2xf32, #tpu.memory_space<vmem>>, %arg9: memref<2x4096xf32, #tpu.memory_space<vmem>>) attributes {dimension_semantics = [], scalar_prefetch = 0 : i64, scratch_operands = 1 : i64, tpu.core_type = #tpu.core_type<tc>} {
    %c0 = arith.constant 0 : index
    %c0_0 = arith.constant 0 : index
    %c0_1 = arith.constant 0 : index
    %0 = vector.load %arg0[%c0, %c0_0, %c0_1] : memref<2x4x290xf32, #tpu.memory_space<vmem>>, vector<2x4x290xf32>
    %c0_2 = arith.constant 0 : index
    %c0_3 = arith.constant 0 : index
    %c0_4 = arith.constant 0 : index
    %1 = vector.load %arg1[%c0_2, %c0_3, %c0_4] : memref<2x4x290xf32, #tpu.memory_space<vmem>>, vector<2x4x290xf32>
    %c0_5 = arith.constant 0 : index
    %c0_6 = arith.constant 0 : index
    %c0_7 = arith.constant 0 : index
    %c0_8 = arith.constant 0 : index
    %2 = vector.load %arg2[%c0_5, %c0_6, %c0_7, %c0_8] : memref<2x9x8x4xf32, #tpu.memory_space<vmem>>, vector<2x9x8x4xf32>
    %c0_9 = arith.constant 0 : index
    %c0_10 = arith.constant 0 : index
    %c0_11 = arith.constant 0 : index
    %3 = vector.load %arg3[%c0_9, %c0_10, %c0_11] : memref<2x8x1xf32, #tpu.memory_space<vmem>>, vector<2x8x1xf32>
    %4 = tpu.iota {dimensions = array<i32: 2>} : vector<2x4x256xi32>
    %c16_i32 = arith.constant 16 : i32
    %c0_i32 = arith.constant 0 : i32
    %5 = arith.cmpi eq, %c16_i32, %c0_i32 : i32
    %c1_i32 = arith.constant 1 : i32
    %6 = arith.select %5, %c1_i32, %c16_i32 : i32
    %7 = vector.broadcast %6 : i32 to vector<2x4x256xi32>
    %8 = arith.remsi %4, %7 : vector<2x4x256xi32>
    %c0_i32_12 = arith.constant 0 : i32
    %9 = vector.broadcast %c0_i32_12 : i32 to vector<2x4x256xi32>
    %10 = arith.cmpi ne, %8, %9 : vector<2x4x256xi32>
    %c0_i32_13 = arith.constant 0 : i32
    %11 = vector.broadcast %c0_i32_13 : i32 to vector<2x4x256xi32>
    %12 = arith.cmpi slt, %8, %11 : vector<2x4x256xi32>
    %c0_i32_14 = arith.constant 0 : i32
    %13 = arith.cmpi slt, %6, %c0_i32_14 : i32
    %14 = vector.broadcast %13 : i1 to vector<2x4x256xi1>
    %15 = vector.broadcast %14 : vector<2x4x256xi1> to vector<2x4x256xi1>
    %16 = arith.xori %12, %15 : vector<2x4x256xi1>
    %17 = arith.andi %16, %10 : vector<2x4x256xi1>
    %18 = vector.broadcast %6 : i32 to vector<2x4x256xi32>
    %19 = arith.addi %8, %18 : vector<2x4x256xi32>
    %20 = arith.select %17, %19, %8 : vector<2x4x256xi1>, vector<2x4x256xi32>
    %cst = arith.constant 0.000000e+00 : f32
    %21 = vector.broadcast %cst : f32 to vector<8x256xf32>
    %cst_15 = arith.constant 0.000000e+00 : f32
    %22 = vector.broadcast %cst_15 : f32 to vector<8x256xf32>
    %23 = vector.extract_strided_slice %0 {offsets = [0, 0, 0], sizes = [2, 4, 256], strides = [1, 1, 1]} : vector<2x4x290xf32> to vector<2x4x256xf32>
    %c1_i32_16 = arith.constant 1 : i32
    %24 = vector.broadcast %c1_i32_16 : i32 to vector<2x4x256xi32>
    %25 = arith.cmpi sge, %20, %24 : vector<2x4x256xi32>
    %cst_17 = arith.constant 0.000000e+00 : f32
    %26 = vector.broadcast %cst_17 : f32 to vector<2x4x256xf32>
    %27 = arith.select %25, %23, %26 : vector<2x4x256xi1>, vector<2x4x256xf32>
    %28 = vector.extract_strided_slice %2 {offsets = [0, 0, 0, 0], sizes = [1, 1, 8, 4], strides = [1, 1, 1, 1]} : vector<2x9x8x4xf32> to vector<1x1x8x4xf32>
    %29 = vector.shape_cast %28 : vector<1x1x8x4xf32> to vector<8x4xf32>
    %30 = vector.extract_strided_slice %27 {offsets = [0, 0, 0], sizes = [1, 4, 256], strides = [1, 1, 1]} : vector<2x4x256xf32> to vector<1x4x256xf32>
    %31 = vector.shape_cast %30 : vector<1x4x256xf32> to vector<4x256xf32>
    %cst_18 = arith.constant dense<0.000000e+00> : vector<8x256xf32>
    %32 = tpu.matmul %29, %31, %cst_18 {dimension_numbers = #tpu.dot_dimension_numbers<[1], [0], [0], [1], [0, 0, 1, 1], [], []>} : vector<8x4xf32>, vector<4x256xf32>, vector<8x256xf32> -> vector<8x256xf32>
    %33 = arith.addf %21, %32 : vector<8x256xf32>
    %34 = vector.extract_strided_slice %27 {offsets = [1, 0, 0], sizes = [1, 4, 256], strides = [1, 1, 1]} : vector<2x4x256xf32> to vector<1x4x256xf32>
    %35 = vector.shape_cast %34 : vector<1x4x256xf32> to vector<4x256xf32>
    %cst_19 = arith.constant dense<0.000000e+00> : vector<8x256xf32>
    %36 = tpu.matmul %29, %35, %cst_19 {dimension_numbers = #tpu.dot_dimension_numbers<[1], [0], [0], [1], [0, 0, 1, 1], [], []>} : vector<8x4xf32>, vector<4x256xf32>, vector<8x256xf32> -> vector<8x256xf32>
    %37 = arith.addf %22, %36 : vector<8x256xf32>
    %38 = vector.extract_strided_slice %0 {offsets = [0, 0, 1], sizes = [2, 4, 256], strides = [1, 1, 1]} : vector<2x4x290xf32> to vector<2x4x256xf32>
    %39 = vector.extract_strided_slice %2 {offsets = [0, 1, 0, 0], sizes = [1, 1, 8, 4], strides = [1, 1, 1, 1]} : vector<2x9x8x4xf32> to vector<1x1x8x4xf32>
    %40 = vector.shape_cast %39 : vector<1x1x8x4xf32> to vector<8x4xf32>
    %41 = vector.extract_strided_slice %38 {offsets = [0, 0, 0], sizes = [1, 4, 256], strides = [1, 1, 1]} : vector<2x4x256xf32> to vector<1x4x256xf32>
    %42 = vector.shape_cast %41 : vector<1x4x256xf32> to vector<4x256xf32>
    %cst_20 = arith.constant dense<0.000000e+00> : vector<8x256xf32>
    %43 = tpu.matmul %40, %42, %cst_20 {dimension_numbers = #tpu.dot_dimension_numbers<[1], [0], [0], [1], [0, 0, 1, 1], [], []>} : vector<8x4xf32>, vector<4x256xf32>, vector<8x256xf32> -> vector<8x256xf32>
    %44 = arith.addf %33, %43 : vector<8x256xf32>
    %45 = vector.extract_strided_slice %38 {offsets = [1, 0, 0], sizes = [1, 4, 256], strides = [1, 1, 1]} : vector<2x4x256xf32> to vector<1x4x256xf32>
    %46 = vector.shape_cast %45 : vector<1x4x256xf32> to vector<4x256xf32>
    %cst_21 = arith.constant dense<0.000000e+00> : vector<8x256xf32>
    %47 = tpu.matmul %40, %46, %cst_21 {dimension_numbers = #tpu.dot_dimension_numbers<[1], [0], [0], [1], [0, 0, 1, 1], [], []>} : vector<8x4xf32>, vector<4x256xf32>, vector<8x256xf32> -> vector<8x256xf32>
    %48 = arith.addf %37, %47 : vector<8x256xf32>
    %49 = vector.extract_strided_slice %0 {offsets = [0, 0, 2], sizes = [2, 4, 256], strides = [1, 1, 1]} : vector<2x4x290xf32> to vector<2x4x256xf32>
    %c14_i32 = arith.constant 14 : i32
    %50 = vector.broadcast %c14_i32 : i32 to vector<2x4x256xi32>
    %51 = arith.cmpi sle, %20, %50 : vector<2x4x256xi32>
    %cst_22 = arith.constant 0.000000e+00 : f32
    %52 = vector.broadcast %cst_22 : f32 to vector<2x4x256xf32>
    %53 = arith.select %51, %49, %52 : vector<2x4x256xi1>, vector<2x4x256xf32>
    %54 = vector.extract_strided_slice %2 {offsets = [0, 2, 0, 0], sizes = [1, 1, 8, 4], strides = [1, 1, 1, 1]} : vector<2x9x8x4xf32> to vector<1x1x8x4xf32>
    %55 = vector.shape_cast %54 : vector<1x1x8x4xf32> to vector<8x4xf32>
    %56 = vector.extract_strided_slice %53 {offsets = [0, 0, 0], sizes = [1, 4, 256], strides = [1, 1, 1]} : vector<2x4x256xf32> to vector<1x4x256xf32>
    %57 = vector.shape_cast %56 : vector<1x4x256xf32> to vector<4x256xf32>
    %cst_23 = arith.constant dense<0.000000e+00> : vector<8x256xf32>
    %58 = tpu.matmul %55, %57, %cst_23 {dimension_numbers = #tpu.dot_dimension_numbers<[1], [0], [0], [1], [0, 0, 1, 1], [], []>} : vector<8x4xf32>, vector<4x256xf32>, vector<8x256xf32> -> vector<8x256xf32>
    %59 = arith.addf %44, %58 : vector<8x256xf32>
    %60 = vector.extract_strided_slice %53 {offsets = [1, 0, 0], sizes = [1, 4, 256], strides = [1, 1, 1]} : vector<2x4x256xf32> to vector<1x4x256xf32>
    %61 = vector.shape_cast %60 : vector<1x4x256xf32> to vector<4x256xf32>
    %cst_24 = arith.constant dense<0.000000e+00> : vector<8x256xf32>
    %62 = tpu.matmul %55, %61, %cst_24 {dimension_numbers = #tpu.dot_dimension_numbers<[1], [0], [0], [1], [0, 0, 1, 1], [], []>} : vector<8x4xf32>, vector<4x256xf32>, vector<8x256xf32> -> vector<8x256xf32>
    %63 = arith.addf %48, %62 : vector<8x256xf32>
    %64 = vector.extract_strided_slice %0 {offsets = [0, 0, 16], sizes = [2, 4, 256], strides = [1, 1, 1]} : vector<2x4x290xf32> to vector<2x4x256xf32>
    %c1_i32_25 = arith.constant 1 : i32
    %65 = vector.broadcast %c1_i32_25 : i32 to vector<2x4x256xi32>
    %66 = arith.cmpi sge, %20, %65 : vector<2x4x256xi32>
    %cst_26 = arith.constant 0.000000e+00 : f32
    %67 = vector.broadcast %cst_26 : f32 to vector<2x4x256xf32>
    %68 = arith.select %66, %64, %67 : vector<2x4x256xi1>, vector<2x4x256xf32>
    %69 = vector.extract_strided_slice %2 {offsets = [0, 3, 0, 0], sizes = [1, 1, 8, 4], strides = [1, 1, 1, 1]} : vector<2x9x8x4xf32> to vector<1x1x8x4xf32>
    %70 = vector.shape_cast %69 : vector<1x1x8x4xf32> to vector<8x4xf32>
    %71 = vector.extract_strided_slice %68 {offsets = [0, 0, 0], sizes = [1, 4, 256], strides = [1, 1, 1]} : vector<2x4x256xf32> to vector<1x4x256xf32>
    %72 = vector.shape_cast %71 : vector<1x4x256xf32> to vector<4x256xf32>
    %cst_27 = arith.constant dense<0.000000e+00> : vector<8x256xf32>
    %73 = tpu.matmul %70, %72, %cst_27 {dimension_numbers = #tpu.dot_dimension_numbers<[1], [0], [0], [1], [0, 0, 1, 1], [], []>} : vector<8x4xf32>, vector<4x256xf32>, vector<8x256xf32> -> vector<8x256xf32>
    %74 = arith.addf %59, %73 : vector<8x256xf32>
    %75 = vector.extract_strided_slice %68 {offsets = [1, 0, 0], sizes = [1, 4, 256], strides = [1, 1, 1]} : vector<2x4x256xf32> to vector<1x4x256xf32>
    %76 = vector.shape_cast %75 : vector<1x4x256xf32> to vector<4x256xf32>
    %cst_28 = arith.constant dense<0.000000e+00> : vector<8x256xf32>
    %77 = tpu.matmul %70, %76, %cst_28 {dimension_numbers = #tpu.dot_dimension_numbers<[1], [0], [0], [1], [0, 0, 1, 1], [], []>} : vector<8x4xf32>, vector<4x256xf32>, vector<8x256xf32> -> vector<8x256xf32>
    %78 = arith.addf %63, %77 : vector<8x256xf32>
    %79 = vector.extract_strided_slice %0 {offsets = [0, 0, 17], sizes = [2, 4, 256], strides = [1, 1, 1]} : vector<2x4x290xf32> to vector<2x4x256xf32>
    %80 = vector.extract_strided_slice %2 {offsets = [0, 4, 0, 0], sizes = [1, 1, 8, 4], strides = [1, 1, 1, 1]} : vector<2x9x8x4xf32> to vector<1x1x8x4xf32>
    %81 = vector.shape_cast %80 : vector<1x1x8x4xf32> to vector<8x4xf32>
    %82 = vector.extract_strided_slice %79 {offsets = [0, 0, 0], sizes = [1, 4, 256], strides = [1, 1, 1]} : vector<2x4x256xf32> to vector<1x4x256xf32>
    %83 = vector.shape_cast %82 : vector<1x4x256xf32> to vector<4x256xf32>
    %cst_29 = arith.constant dense<0.000000e+00> : vector<8x256xf32>
    %84 = tpu.matmul %81, %83, %cst_29 {dimension_numbers = #tpu.dot_dimension_numbers<[1], [0], [0], [1], [0, 0, 1, 1], [], []>} : vector<8x4xf32>, vector<4x256xf32>, vector<8x256xf32> -> vector<8x256xf32>
    %85 = arith.addf %74, %84 : vector<8x256xf32>
    %86 = vector.extract_strided_slice %79 {offsets = [1, 0, 0], sizes = [1, 4, 256], strides = [1, 1, 1]} : vector<2x4x256xf32> to vector<1x4x256xf32>
    %87 = vector.shape_cast %86 : vector<1x4x256xf32> to vector<4x256xf32>
    %cst_30 = arith.constant dense<0.000000e+00> : vector<8x256xf32>
    %88 = tpu.matmul %81, %87, %cst_30 {dimension_numbers = #tpu.dot_dimension_numbers<[1], [0], [0], [1], [0, 0, 1, 1], [], []>} : vector<8x4xf32>, vector<4x256xf32>, vector<8x256xf32> -> vector<8x256xf32>
    %89 = arith.addf %78, %88 : vector<8x256xf32>
    %90 = vector.extract_strided_slice %0 {offsets = [0, 0, 18], sizes = [2, 4, 256], strides = [1, 1, 1]} : vector<2x4x290xf32> to vector<2x4x256xf32>
    %c14_i32_31 = arith.constant 14 : i32
    %91 = vector.broadcast %c14_i32_31 : i32 to vector<2x4x256xi32>
    %92 = arith.cmpi sle, %20, %91 : vector<2x4x256xi32>
    %cst_32 = arith.constant 0.000000e+00 : f32
    %93 = vector.broadcast %cst_32 : f32 to vector<2x4x256xf32>
    %94 = arith.select %92, %90, %93 : vector<2x4x256xi1>, vector<2x4x256xf32>
    %95 = vector.extract_strided_slice %2 {offsets = [0, 5, 0, 0], sizes = [1, 1, 8, 4], strides = [1, 1, 1, 1]} : vector<2x9x8x4xf32> to vector<1x1x8x4xf32>
    %96 = vector.shape_cast %95 : vector<1x1x8x4xf32> to vector<8x4xf32>
    %97 = vector.extract_strided_slice %94 {offsets = [0, 0, 0], sizes = [1, 4, 256], strides = [1, 1, 1]} : vector<2x4x256xf32> to vector<1x4x256xf32>
    %98 = vector.shape_cast %97 : vector<1x4x256xf32> to vector<4x256xf32>
    %cst_33 = arith.constant dense<0.000000e+00> : vector<8x256xf32>
    %99 = tpu.matmul %96, %98, %cst_33 {dimension_numbers = #tpu.dot_dimension_numbers<[1], [0], [0], [1], [0, 0, 1, 1], [], []>} : vector<8x4xf32>, vector<4x256xf32>, vector<8x256xf32> -> vector<8x256xf32>
    %100 = arith.addf %85, %99 : vector<8x256xf32>
    %101 = vector.extract_strided_slice %94 {offsets = [1, 0, 0], sizes = [1, 4, 256], strides = [1, 1, 1]} : vector<2x4x256xf32> to vector<1x4x256xf32>
    %102 = vector.shape_cast %101 : vector<1x4x256xf32> to vector<4x256xf32>
    %cst_34 = arith.constant dense<0.000000e+00> : vector<8x256xf32>
    %103 = tpu.matmul %96, %102, %cst_34 {dimension_numbers = #tpu.dot_dimension_numbers<[1], [0], [0], [1], [0, 0, 1, 1], [], []>} : vector<8x4xf32>, vector<4x256xf32>, vector<8x256xf32> -> vector<8x256xf32>
    %104 = arith.addf %89, %103 : vector<8x256xf32>
    %105 = vector.extract_strided_slice %0 {offsets = [0, 0, 32], sizes = [2, 4, 256], strides = [1, 1, 1]} : vector<2x4x290xf32> to vector<2x4x256xf32>
    %c1_i32_35 = arith.constant 1 : i32
    %106 = vector.broadcast %c1_i32_35 : i32 to vector<2x4x256xi32>
    %107 = arith.cmpi sge, %20, %106 : vector<2x4x256xi32>
    %cst_36 = arith.constant 0.000000e+00 : f32
    %108 = vector.broadcast %cst_36 : f32 to vector<2x4x256xf32>
    %109 = arith.select %107, %105, %108 : vector<2x4x256xi1>, vector<2x4x256xf32>
    %110 = vector.extract_strided_slice %2 {offsets = [0, 6, 0, 0], sizes = [1, 1, 8, 4], strides = [1, 1, 1, 1]} : vector<2x9x8x4xf32> to vector<1x1x8x4xf32>
    %111 = vector.shape_cast %110 : vector<1x1x8x4xf32> to vector<8x4xf32>
    %112 = vector.extract_strided_slice %109 {offsets = [0, 0, 0], sizes = [1, 4, 256], strides = [1, 1, 1]} : vector<2x4x256xf32> to vector<1x4x256xf32>
    %113 = vector.shape_cast %112 : vector<1x4x256xf32> to vector<4x256xf32>
    %cst_37 = arith.constant dense<0.000000e+00> : vector<8x256xf32>
    %114 = tpu.matmul %111, %113, %cst_37 {dimension_numbers = #tpu.dot_dimension_numbers<[1], [0], [0], [1], [0, 0, 1, 1], [], []>} : vector<8x4xf32>, vector<4x256xf32>, vector<8x256xf32> -> vector<8x256xf32>
    %115 = arith.addf %100, %114 : vector<8x256xf32>
    %116 = vector.extract_strided_slice %109 {offsets = [1, 0, 0], sizes = [1, 4, 256], strides = [1, 1, 1]} : vector<2x4x256xf32> to vector<1x4x256xf32>
    %117 = vector.shape_cast %116 : vector<1x4x256xf32> to vector<4x256xf32>
    %cst_38 = arith.constant dense<0.000000e+00> : vector<8x256xf32>
    %118 = tpu.matmul %111, %117, %cst_38 {dimension_numbers = #tpu.dot_dimension_numbers<[1], [0], [0], [1], [0, 0, 1, 1], [], []>} : vector<8x4xf32>, vector<4x256xf32>, vector<8x256xf32> -> vector<8x256xf32>
    %119 = arith.addf %104, %118 : vector<8x256xf32>
    %120 = vector.extract_strided_slice %0 {offsets = [0, 0, 33], sizes = [2, 4, 256], strides = [1, 1, 1]} : vector<2x4x290xf32> to vector<2x4x256xf32>
    %121 = vector.extract_strided_slice %2 {offsets = [0, 7, 0, 0], sizes = [1, 1, 8, 4], strides = [1, 1, 1, 1]} : vector<2x9x8x4xf32> to vector<1x1x8x4xf32>
    %122 = vector.shape_cast %121 : vector<1x1x8x4xf32> to vector<8x4xf32>
    %123 = vector.extract_strided_slice %120 {offsets = [0, 0, 0], sizes = [1, 4, 256], strides = [1, 1, 1]} : vector<2x4x256xf32> to vector<1x4x256xf32>
    %124 = vector.shape_cast %123 : vector<1x4x256xf32> to vector<4x256xf32>
    %cst_39 = arith.constant dense<0.000000e+00> : vector<8x256xf32>
    %125 = tpu.matmul %122, %124, %cst_39 {dimension_numbers = #tpu.dot_dimension_numbers<[1], [0], [0], [1], [0, 0, 1, 1], [], []>} : vector<8x4xf32>, vector<4x256xf32>, vector<8x256xf32> -> vector<8x256xf32>
    %126 = arith.addf %115, %125 : vector<8x256xf32>
    %127 = vector.extract_strided_slice %120 {offsets = [1, 0, 0], sizes = [1, 4, 256], strides = [1, 1, 1]} : vector<2x4x256xf32> to vector<1x4x256xf32>
    %128 = vector.shape_cast %127 : vector<1x4x256xf32> to vector<4x256xf32>
    %cst_40 = arith.constant dense<0.000000e+00> : vector<8x256xf32>
    %129 = tpu.matmul %122, %128, %cst_40 {dimension_numbers = #tpu.dot_dimension_numbers<[1], [0], [0], [1], [0, 0, 1, 1], [], []>} : vector<8x4xf32>, vector<4x256xf32>, vector<8x256xf32> -> vector<8x256xf32>
    %130 = arith.addf %119, %129 : vector<8x256xf32>
    %131 = vector.extract_strided_slice %0 {offsets = [0, 0, 34], sizes = [2, 4, 256], strides = [1, 1, 1]} : vector<2x4x290xf32> to vector<2x4x256xf32>
    %c14_i32_41 = arith.constant 14 : i32
    %132 = vector.broadcast %c14_i32_41 : i32 to vector<2x4x256xi32>
    %133 = arith.cmpi sle, %20, %132 : vector<2x4x256xi32>
    %cst_42 = arith.constant 0.000000e+00 : f32
    %134 = vector.broadcast %cst_42 : f32 to vector<2x4x256xf32>
    %135 = arith.select %133, %131, %134 : vector<2x4x256xi1>, vector<2x4x256xf32>
    %136 = vector.extract_strided_slice %2 {offsets = [0, 8, 0, 0], sizes = [1, 1, 8, 4], strides = [1, 1, 1, 1]} : vector<2x9x8x4xf32> to vector<1x1x8x4xf32>
    %137 = vector.shape_cast %136 : vector<1x1x8x4xf32> to vector<8x4xf32>
    %138 = vector.extract_strided_slice %135 {offsets = [0, 0, 0], sizes = [1, 4, 256], strides = [1, 1, 1]} : vector<2x4x256xf32> to vector<1x4x256xf32>
    %139 = vector.shape_cast %138 : vector<1x4x256xf32> to vector<4x256xf32>
    %cst_43 = arith.constant dense<0.000000e+00> : vector<8x256xf32>
    %140 = tpu.matmul %137, %139, %cst_43 {dimension_numbers = #tpu.dot_dimension_numbers<[1], [0], [0], [1], [0, 0, 1, 1], [], []>} : vector<8x4xf32>, vector<4x256xf32>, vector<8x256xf32> -> vector<8x256xf32>
    %141 = arith.addf %126, %140 : vector<8x256xf32>
    %142 = vector.extract_strided_slice %135 {offsets = [1, 0, 0], sizes = [1, 4, 256], strides = [1, 1, 1]} : vector<2x4x256xf32> to vector<1x4x256xf32>
    %143 = vector.shape_cast %142 : vector<1x4x256xf32> to vector<4x256xf32>
    %cst_44 = arith.constant dense<0.000000e+00> : vector<8x256xf32>
    %144 = tpu.matmul %137, %143, %cst_44 {dimension_numbers = #tpu.dot_dimension_numbers<[1], [0], [0], [1], [0, 0, 1, 1], [], []>} : vector<8x4xf32>, vector<4x256xf32>, vector<8x256xf32> -> vector<8x256xf32>
    %145 = arith.addf %130, %144 : vector<8x256xf32>
    %146 = vector.extract_strided_slice %3 {offsets = [0, 0, 0], sizes = [1, 8, 1], strides = [1, 1, 1]} : vector<2x8x1xf32> to vector<1x8x1xf32>
    %147 = vector.shape_cast %146 : vector<1x8x1xf32> to vector<8x1xf32>
    %148 = vector.broadcast %147 : vector<8x1xf32> to vector<8x256xf32>
    %149 = arith.addf %141, %148 : vector<8x256xf32>
    %cst_45 = arith.constant 0.000000e+00 : f32
    %150 = vector.broadcast %cst_45 : f32 to vector<8x256xf32>
    %151 = arith.maximumf %149, %150 : vector<8x256xf32>
    %152 = vector.extract_strided_slice %151 {offsets = [0, 0], sizes = [1, 256], strides = [1, 1]} : vector<8x256xf32> to vector<1x256xf32>
    %c0_46 = arith.constant 0 : index
    %c0_47 = arith.constant 0 : index
    %153 = vector.load %arg9[%c0_46, %c0_47] : memref<2x4096xf32, #tpu.memory_space<vmem>>, vector<1x256xf32>
    tpu.vector_store %arg9[%c0_46, %c0_47], %152 {strides = array<i32>} : memref<2x4096xf32, #tpu.memory_space<vmem>>, vector<1x256xf32>,
    %154 = vector.extract_strided_slice %151 {offsets = [1, 0], sizes = [1, 256], strides = [1, 1]} : vector<8x256xf32> to vector<1x256xf32>
    %c0_48 = arith.constant 0 : index
    %c256 = arith.constant 256 : index
    %155 = vector.load %arg9[%c0_48, %c256] : memref<2x4096xf32, #tpu.memory_space<vmem>>, vector<1x256xf32>
    tpu.vector_store %arg9[%c0_48, %c256], %154 {strides = array<i32>} : memref<2x4096xf32, #tpu.memory_space<vmem>>, vector<1x256xf32>,
    %156 = vector.extract_strided_slice %151 {offsets = [2, 0], sizes = [1, 256], strides = [1, 1]} : vector<8x256xf32> to vector<1x256xf32>
    %c0_49 = arith.constant 0 : index
    %c512 = arith.constant 512 : index
    %157 = vector.load %arg9[%c0_49, %c512] : memref<2x4096xf32, #tpu.memory_space<vmem>>, vector<1x256xf32>
    tpu.vector_store %arg9[%c0_49, %c512], %156 {strides = array<i32>} : memref<2x4096xf32, #tpu.memory_space<vmem>>, vector<1x256xf32>,
    %158 = vector.extract_strided_slice %151 {offsets = [3, 0], sizes = [1, 256], strides = [1, 1]} : vector<8x256xf32> to vector<1x256xf32>
    %c0_50 = arith.constant 0 : index
    %c768 = arith.constant 768 : index
    %159 = vector.load %arg9[%c0_50, %c768] : memref<2x4096xf32, #tpu.memory_space<vmem>>, vector<1x256xf32>
    tpu.vector_store %arg9[%c0_50, %c768], %158 {strides = array<i32>} : memref<2x4096xf32, #tpu.memory_space<vmem>>, vector<1x256xf32>,
    %160 = vector.extract_strided_slice %151 {offsets = [4, 0], sizes = [1, 256], strides = [1, 1]} : vector<8x256xf32> to vector<1x256xf32>
    %c0_51 = arith.constant 0 : index
    %c1024 = arith.constant 1024 : index
    %161 = vector.load %arg9[%c0_51, %c1024] : memref<2x4096xf32, #tpu.memory_space<vmem>>, vector<1x256xf32>
    tpu.vector_store %arg9[%c0_51, %c1024], %160 {strides = array<i32>} : memref<2x4096xf32, #tpu.memory_space<vmem>>, vector<1x256xf32>,
    %162 = vector.extract_strided_slice %151 {offsets = [5, 0], sizes = [1, 256], strides = [1, 1]} : vector<8x256xf32> to vector<1x256xf32>
    %c0_52 = arith.constant 0 : index
    %c1280 = arith.constant 1280 : index
    %163 = vector.load %arg9[%c0_52, %c1280] : memref<2x4096xf32, #tpu.memory_space<vmem>>, vector<1x256xf32>
    tpu.vector_store %arg9[%c0_52, %c1280], %162 {strides = array<i32>} : memref<2x4096xf32, #tpu.memory_space<vmem>>, vector<1x256xf32>,
    %164 = vector.extract_strided_slice %151 {offsets = [6, 0], sizes = [1, 256], strides = [1, 1]} : vector<8x256xf32> to vector<1x256xf32>
    %c0_53 = arith.constant 0 : index
    %c1536 = arith.constant 1536 : index
    %165 = vector.load %arg9[%c0_53, %c1536] : memref<2x4096xf32, #tpu.memory_space<vmem>>, vector<1x256xf32>
    tpu.vector_store %arg9[%c0_53, %c1536], %164 {strides = array<i32>} : memref<2x4096xf32, #tpu.memory_space<vmem>>, vector<1x256xf32>,
    %166 = vector.extract_strided_slice %151 {offsets = [7, 0], sizes = [1, 256], strides = [1, 1]} : vector<8x256xf32> to vector<1x256xf32>
    %c0_54 = arith.constant 0 : index
    %c1792 = arith.constant 1792 : index
    %167 = vector.load %arg9[%c0_54, %c1792] : memref<2x4096xf32, #tpu.memory_space<vmem>>, vector<1x256xf32>
    tpu.vector_store %arg9[%c0_54, %c1792], %166 {strides = array<i32>} : memref<2x4096xf32, #tpu.memory_space<vmem>>, vector<1x256xf32>,
    %168 = vector.extract_strided_slice %3 {offsets = [0, 0, 0], sizes = [1, 8, 1], strides = [1, 1, 1]} : vector<2x8x1xf32> to vector<1x8x1xf32>
    %169 = vector.shape_cast %168 : vector<1x8x1xf32> to vector<8x1xf32>
    %170 = vector.broadcast %169 : vector<8x1xf32> to vector<8x256xf32>
    %171 = arith.addf %145, %170 : vector<8x256xf32>
    %cst_55 = arith.constant 0.000000e+00 : f32
    %172 = vector.broadcast %cst_55 : f32 to vector<8x256xf32>
    %173 = arith.maximumf %171, %172 : vector<8x256xf32>
    %174 = vector.extract_strided_slice %173 {offsets = [0, 0], sizes = [1, 256], strides = [1, 1]} : vector<8x256xf32> to vector<1x256xf32>
    %c1 = arith.constant 1 : index
    %c0_56 = arith.constant 0 : index
    %175 = vector.load %arg9[%c1, %c0_56] : memref<2x4096xf32, #tpu.memory_space<vmem>>, vector<1x256xf32>
    tpu.vector_store %arg9[%c1, %c0_56], %174 {strides = array<i32>} : memref<2x4096xf32, #tpu.memory_space<vmem>>, vector<1x256xf32>,
    %176 = vector.extract_strided_slice %173 {offsets = [1, 0], sizes = [1, 256], strides = [1, 1]} : vector<8x256xf32> to vector<1x256xf32>
    %c1_57 = arith.constant 1 : index
    %c256_58 = arith.constant 256 : index
    %177 = vector.load %arg9[%c1_57, %c256_58] : memref<2x4096xf32, #tpu.memory_space<vmem>>, vector<1x256xf32>
    tpu.vector_store %arg9[%c1_57, %c256_58], %176 {strides = array<i32>} : memref<2x4096xf32, #tpu.memory_space<vmem>>, vector<1x256xf32>,
    %178 = vector.extract_strided_slice %173 {offsets = [2, 0], sizes = [1, 256], strides = [1, 1]} : vector<8x256xf32> to vector<1x256xf32>
    %c1_59 = arith.constant 1 : index
    %c512_60 = arith.constant 512 : index
    %179 = vector.load %arg9[%c1_59, %c512_60] : memref<2x4096xf32, #tpu.memory_space<vmem>>, vector<1x256xf32>
    tpu.vector_store %arg9[%c1_59, %c512_60], %178 {strides = array<i32>} : memref<2x4096xf32, #tpu.memory_space<vmem>>, vector<1x256xf32>,
    %180 = vector.extract_strided_slice %173 {offsets = [3, 0], sizes = [1, 256], strides = [1, 1]} : vector<8x256xf32> to vector<1x256xf32>
    %c1_61 = arith.constant 1 : index
    %c768_62 = arith.constant 768 : index
    %181 = vector.load %arg9[%c1_61, %c768_62] : memref<2x4096xf32, #tpu.memory_space<vmem>>, vector<1x256xf32>
    tpu.vector_store %arg9[%c1_61, %c768_62], %180 {strides = array<i32>} : memref<2x4096xf32, #tpu.memory_space<vmem>>, vector<1x256xf32>,
    %182 = vector.extract_strided_slice %173 {offsets = [4, 0], sizes = [1, 256], strides = [1, 1]} : vector<8x256xf32> to vector<1x256xf32>
    %c1_63 = arith.constant 1 : index
    %c1024_64 = arith.constant 1024 : index
    %183 = vector.load %arg9[%c1_63, %c1024_64] : memref<2x4096xf32, #tpu.memory_space<vmem>>, vector<1x256xf32>
    tpu.vector_store %arg9[%c1_63, %c1024_64], %182 {strides = array<i32>} : memref<2x4096xf32, #tpu.memory_space<vmem>>, vector<1x256xf32>,
    %184 = vector.extract_strided_slice %173 {offsets = [5, 0], sizes = [1, 256], strides = [1, 1]} : vector<8x256xf32> to vector<1x256xf32>
    %c1_65 = arith.constant 1 : index
    %c1280_66 = arith.constant 1280 : index
    %185 = vector.load %arg9[%c1_65, %c1280_66] : memref<2x4096xf32, #tpu.memory_space<vmem>>, vector<1x256xf32>
    tpu.vector_store %arg9[%c1_65, %c1280_66], %184 {strides = array<i32>} : memref<2x4096xf32, #tpu.memory_space<vmem>>, vector<1x256xf32>,
    %186 = vector.extract_strided_slice %173 {offsets = [6, 0], sizes = [1, 256], strides = [1, 1]} : vector<8x256xf32> to vector<1x256xf32>
    %c1_67 = arith.constant 1 : index
    %c1536_68 = arith.constant 1536 : index
    %187 = vector.load %arg9[%c1_67, %c1536_68] : memref<2x4096xf32, #tpu.memory_space<vmem>>, vector<1x256xf32>
    tpu.vector_store %arg9[%c1_67, %c1536_68], %186 {strides = array<i32>} : memref<2x4096xf32, #tpu.memory_space<vmem>>, vector<1x256xf32>,
    %188 = vector.extract_strided_slice %173 {offsets = [7, 0], sizes = [1, 256], strides = [1, 1]} : vector<8x256xf32> to vector<1x256xf32>
    %c1_69 = arith.constant 1 : index
    %c1792_70 = arith.constant 1792 : index
    %189 = vector.load %arg9[%c1_69, %c1792_70] : memref<2x4096xf32, #tpu.memory_space<vmem>>, vector<1x256xf32>
    tpu.vector_store %arg9[%c1_69, %c1792_70], %188 {strides = array<i32>} : memref<2x4096xf32, #tpu.memory_space<vmem>>, vector<1x256xf32>,
    %cst_71 = arith.constant 0.000000e+00 : f32
    %190 = vector.broadcast %cst_71 : f32 to vector<8x256xf32>
    %cst_72 = arith.constant 0.000000e+00 : f32
    %191 = vector.broadcast %cst_72 : f32 to vector<8x256xf32>
    %192 = vector.extract_strided_slice %1 {offsets = [0, 0, 0], sizes = [2, 4, 256], strides = [1, 1, 1]} : vector<2x4x290xf32> to vector<2x4x256xf32>
    %c1_i32_73 = arith.constant 1 : i32
    %193 = vector.broadcast %c1_i32_73 : i32 to vector<2x4x256xi32>
    %194 = arith.cmpi sge, %20, %193 : vector<2x4x256xi32>
    %cst_74 = arith.constant 0.000000e+00 : f32
    %195 = vector.broadcast %cst_74 : f32 to vector<2x4x256xf32>
    %196 = arith.select %194, %192, %195 : vector<2x4x256xi1>, vector<2x4x256xf32>
    %197 = vector.extract_strided_slice %2 {offsets = [1, 0, 0, 0], sizes = [1, 1, 8, 4], strides = [1, 1, 1, 1]} : vector<2x9x8x4xf32> to vector<1x1x8x4xf32>
    %198 = vector.shape_cast %197 : vector<1x1x8x4xf32> to vector<8x4xf32>
    %199 = vector.extract_strided_slice %196 {offsets = [0, 0, 0], sizes = [1, 4, 256], strides = [1, 1, 1]} : vector<2x4x256xf32> to vector<1x4x256xf32>
    %200 = vector.shape_cast %199 : vector<1x4x256xf32> to vector<4x256xf32>
    %cst_75 = arith.constant dense<0.000000e+00> : vector<8x256xf32>
    %201 = tpu.matmul %198, %200, %cst_75 {dimension_numbers = #tpu.dot_dimension_numbers<[1], [0], [0], [1], [0, 0, 1, 1], [], []>} : vector<8x4xf32>, vector<4x256xf32>, vector<8x256xf32> -> vector<8x256xf32>
    %202 = arith.addf %190, %201 : vector<8x256xf32>
    %203 = vector.extract_strided_slice %196 {offsets = [1, 0, 0], sizes = [1, 4, 256], strides = [1, 1, 1]} : vector<2x4x256xf32> to vector<1x4x256xf32>
    %204 = vector.shape_cast %203 : vector<1x4x256xf32> to vector<4x256xf32>
    %cst_76 = arith.constant dense<0.000000e+00> : vector<8x256xf32>
    %205 = tpu.matmul %198, %204, %cst_76 {dimension_numbers = #tpu.dot_dimension_numbers<[1], [0], [0], [1], [0, 0, 1, 1], [], []>} : vector<8x4xf32>, vector<4x256xf32>, vector<8x256xf32> -> vector<8x256xf32>
    %206 = arith.addf %191, %205 : vector<8x256xf32>
    %207 = vector.extract_strided_slice %1 {offsets = [0, 0, 1], sizes = [2, 4, 256], strides = [1, 1, 1]} : vector<2x4x290xf32> to vector<2x4x256xf32>
    %208 = vector.extract_strided_slice %2 {offsets = [1, 1, 0, 0], sizes = [1, 1, 8, 4], strides = [1, 1, 1, 1]} : vector<2x9x8x4xf32> to vector<1x1x8x4xf32>
    %209 = vector.shape_cast %208 : vector<1x1x8x4xf32> to vector<8x4xf32>
    %210 = vector.extract_strided_slice %207 {offsets = [0, 0, 0], sizes = [1, 4, 256], strides = [1, 1, 1]} : vector<2x4x256xf32> to vector<1x4x256xf32>
    %211 = vector.shape_cast %210 : vector<1x4x256xf32> to vector<4x256xf32>
    %cst_77 = arith.constant dense<0.000000e+00> : vector<8x256xf32>
    %212 = tpu.matmul %209, %211, %cst_77 {dimension_numbers = #tpu.dot_dimension_numbers<[1], [0], [0], [1], [0, 0, 1, 1], [], []>} : vector<8x4xf32>, vector<4x256xf32>, vector<8x256xf32> -> vector<8x256xf32>
    %213 = arith.addf %202, %212 : vector<8x256xf32>
    %214 = vector.extract_strided_slice %207 {offsets = [1, 0, 0], sizes = [1, 4, 256], strides = [1, 1, 1]} : vector<2x4x256xf32> to vector<1x4x256xf32>
    %215 = vector.shape_cast %214 : vector<1x4x256xf32> to vector<4x256xf32>
    %cst_78 = arith.constant dense<0.000000e+00> : vector<8x256xf32>
    %216 = tpu.matmul %209, %215, %cst_78 {dimension_numbers = #tpu.dot_dimension_numbers<[1], [0], [0], [1], [0, 0, 1, 1], [], []>} : vector<8x4xf32>, vector<4x256xf32>, vector<8x256xf32> -> vector<8x256xf32>
    %217 = arith.addf %206, %216 : vector<8x256xf32>
    %218 = vector.extract_strided_slice %1 {offsets = [0, 0, 2], sizes = [2, 4, 256], strides = [1, 1, 1]} : vector<2x4x290xf32> to vector<2x4x256xf32>
    %c14_i32_79 = arith.constant 14 : i32
    %219 = vector.broadcast %c14_i32_79 : i32 to vector<2x4x256xi32>
    %220 = arith.cmpi sle, %20, %219 : vector<2x4x256xi32>
    %cst_80 = arith.constant 0.000000e+00 : f32
    %221 = vector.broadcast %cst_80 : f32 to vector<2x4x256xf32>
    %222 = arith.select %220, %218, %221 : vector<2x4x256xi1>, vector<2x4x256xf32>
    %223 = vector.extract_strided_slice %2 {offsets = [1, 2, 0, 0], sizes = [1, 1, 8, 4], strides = [1, 1, 1, 1]} : vector<2x9x8x4xf32> to vector<1x1x8x4xf32>
    %224 = vector.shape_cast %223 : vector<1x1x8x4xf32> to vector<8x4xf32>
    %225 = vector.extract_strided_slice %222 {offsets = [0, 0, 0], sizes = [1, 4, 256], strides = [1, 1, 1]} : vector<2x4x256xf32> to vector<1x4x256xf32>
    %226 = vector.shape_cast %225 : vector<1x4x256xf32> to vector<4x256xf32>
    %cst_81 = arith.constant dense<0.000000e+00> : vector<8x256xf32>
    %227 = tpu.matmul %224, %226, %cst_81 {dimension_numbers = #tpu.dot_dimension_numbers<[1], [0], [0], [1], [0, 0, 1, 1], [], []>} : vector<8x4xf32>, vector<4x256xf32>, vector<8x256xf32> -> vector<8x256xf32>
    %228 = arith.addf %213, %227 : vector<8x256xf32>
    %229 = vector.extract_strided_slice %222 {offsets = [1, 0, 0], sizes = [1, 4, 256], strides = [1, 1, 1]} : vector<2x4x256xf32> to vector<1x4x256xf32>
    %230 = vector.shape_cast %229 : vector<1x4x256xf32> to vector<4x256xf32>
    %cst_82 = arith.constant dense<0.000000e+00> : vector<8x256xf32>
    %231 = tpu.matmul %224, %230, %cst_82 {dimension_numbers = #tpu.dot_dimension_numbers<[1], [0], [0], [1], [0, 0, 1, 1], [], []>} : vector<8x4xf32>, vector<4x256xf32>, vector<8x256xf32> -> vector<8x256xf32>
    %232 = arith.addf %217, %231 : vector<8x256xf32>
    %233 = vector.extract_strided_slice %1 {offsets = [0, 0, 16], sizes = [2, 4, 256], strides = [1, 1, 1]} : vector<2x4x290xf32> to vector<2x4x256xf32>
    %c1_i32_83 = arith.constant 1 : i32
    %234 = vector.broadcast %c1_i32_83 : i32 to vector<2x4x256xi32>
    %235 = arith.cmpi sge, %20, %234 : vector<2x4x256xi32>
    %cst_84 = arith.constant 0.000000e+00 : f32
    %236 = vector.broadcast %cst_84 : f32 to vector<2x4x256xf32>
    %237 = arith.select %235, %233, %236 : vector<2x4x256xi1>, vector<2x4x256xf32>
    %238 = vector.extract_strided_slice %2 {offsets = [1, 3, 0, 0], sizes = [1, 1, 8, 4], strides = [1, 1, 1, 1]} : vector<2x9x8x4xf32> to vector<1x1x8x4xf32>
    %239 = vector.shape_cast %238 : vector<1x1x8x4xf32> to vector<8x4xf32>
    %240 = vector.extract_strided_slice %237 {offsets = [0, 0, 0], sizes = [1, 4, 256], strides = [1, 1, 1]} : vector<2x4x256xf32> to vector<1x4x256xf32>
    %241 = vector.shape_cast %240 : vector<1x4x256xf32> to vector<4x256xf32>
    %cst_85 = arith.constant dense<0.000000e+00> : vector<8x256xf32>
    %242 = tpu.matmul %239, %241, %cst_85 {dimension_numbers = #tpu.dot_dimension_numbers<[1], [0], [0], [1], [0, 0, 1, 1], [], []>} : vector<8x4xf32>, vector<4x256xf32>, vector<8x256xf32> -> vector<8x256xf32>
    %243 = arith.addf %228, %242 : vector<8x256xf32>
    %244 = vector.extract_strided_slice %237 {offsets = [1, 0, 0], sizes = [1, 4, 256], strides = [1, 1, 1]} : vector<2x4x256xf32> to vector<1x4x256xf32>
    %245 = vector.shape_cast %244 : vector<1x4x256xf32> to vector<4x256xf32>
    %cst_86 = arith.constant dense<0.000000e+00> : vector<8x256xf32>
    %246 = tpu.matmul %239, %245, %cst_86 {dimension_numbers = #tpu.dot_dimension_numbers<[1], [0], [0], [1], [0, 0, 1, 1], [], []>} : vector<8x4xf32>, vector<4x256xf32>, vector<8x256xf32> -> vector<8x256xf32>
    %247 = arith.addf %232, %246 : vector<8x256xf32>
    %248 = vector.extract_strided_slice %1 {offsets = [0, 0, 17], sizes = [2, 4, 256], strides = [1, 1, 1]} : vector<2x4x290xf32> to vector<2x4x256xf32>
    %249 = vector.extract_strided_slice %2 {offsets = [1, 4, 0, 0], sizes = [1, 1, 8, 4], strides = [1, 1, 1, 1]} : vector<2x9x8x4xf32> to vector<1x1x8x4xf32>
    %250 = vector.shape_cast %249 : vector<1x1x8x4xf32> to vector<8x4xf32>
    %251 = vector.extract_strided_slice %248 {offsets = [0, 0, 0], sizes = [1, 4, 256], strides = [1, 1, 1]} : vector<2x4x256xf32> to vector<1x4x256xf32>
    %252 = vector.shape_cast %251 : vector<1x4x256xf32> to vector<4x256xf32>
    %cst_87 = arith.constant dense<0.000000e+00> : vector<8x256xf32>
    %253 = tpu.matmul %250, %252, %cst_87 {dimension_numbers = #tpu.dot_dimension_numbers<[1], [0], [0], [1], [0, 0, 1, 1], [], []>} : vector<8x4xf32>, vector<4x256xf32>, vector<8x256xf32> -> vector<8x256xf32>
    %254 = arith.addf %243, %253 : vector<8x256xf32>
    %255 = vector.extract_strided_slice %248 {offsets = [1, 0, 0], sizes = [1, 4, 256], strides = [1, 1, 1]} : vector<2x4x256xf32> to vector<1x4x256xf32>
    %256 = vector.shape_cast %255 : vector<1x4x256xf32> to vector<4x256xf32>
    %cst_88 = arith.constant dense<0.000000e+00> : vector<8x256xf32>
    %257 = tpu.matmul %250, %256, %cst_88 {dimension_numbers = #tpu.dot_dimension_numbers<[1], [0], [0], [1], [0, 0, 1, 1], [], []>} : vector<8x4xf32>, vector<4x256xf32>, vector<8x256xf32> -> vector<8x256xf32>
    %258 = arith.addf %247, %257 : vector<8x256xf32>
    %259 = vector.extract_strided_slice %1 {offsets = [0, 0, 18], sizes = [2, 4, 256], strides = [1, 1, 1]} : vector<2x4x290xf32> to vector<2x4x256xf32>
    %c14_i32_89 = arith.constant 14 : i32
    %260 = vector.broadcast %c14_i32_89 : i32 to vector<2x4x256xi32>
    %261 = arith.cmpi sle, %20, %260 : vector<2x4x256xi32>
    %cst_90 = arith.constant 0.000000e+00 : f32
    %262 = vector.broadcast %cst_90 : f32 to vector<2x4x256xf32>
    %263 = arith.select %261, %259, %262 : vector<2x4x256xi1>, vector<2x4x256xf32>
    %264 = vector.extract_strided_slice %2 {offsets = [1, 5, 0, 0], sizes = [1, 1, 8, 4], strides = [1, 1, 1, 1]} : vector<2x9x8x4xf32> to vector<1x1x8x4xf32>
    %265 = vector.shape_cast %264 : vector<1x1x8x4xf32> to vector<8x4xf32>
    %266 = vector.extract_strided_slice %263 {offsets = [0, 0, 0], sizes = [1, 4, 256], strides = [1, 1, 1]} : vector<2x4x256xf32> to vector<1x4x256xf32>
    %267 = vector.shape_cast %266 : vector<1x4x256xf32> to vector<4x256xf32>
    %cst_91 = arith.constant dense<0.000000e+00> : vector<8x256xf32>
    %268 = tpu.matmul %265, %267, %cst_91 {dimension_numbers = #tpu.dot_dimension_numbers<[1], [0], [0], [1], [0, 0, 1, 1], [], []>} : vector<8x4xf32>, vector<4x256xf32>, vector<8x256xf32> -> vector<8x256xf32>
    %269 = arith.addf %254, %268 : vector<8x256xf32>
    %270 = vector.extract_strided_slice %263 {offsets = [1, 0, 0], sizes = [1, 4, 256], strides = [1, 1, 1]} : vector<2x4x256xf32> to vector<1x4x256xf32>
    %271 = vector.shape_cast %270 : vector<1x4x256xf32> to vector<4x256xf32>
    %cst_92 = arith.constant dense<0.000000e+00> : vector<8x256xf32>
    %272 = tpu.matmul %265, %271, %cst_92 {dimension_numbers = #tpu.dot_dimension_numbers<[1], [0], [0], [1], [0, 0, 1, 1], [], []>} : vector<8x4xf32>, vector<4x256xf32>, vector<8x256xf32> -> vector<8x256xf32>
    %273 = arith.addf %258, %272 : vector<8x256xf32>
    %274 = vector.extract_strided_slice %1 {offsets = [0, 0, 32], sizes = [2, 4, 256], strides = [1, 1, 1]} : vector<2x4x290xf32> to vector<2x4x256xf32>
    %c1_i32_93 = arith.constant 1 : i32
    %275 = vector.broadcast %c1_i32_93 : i32 to vector<2x4x256xi32>
    %276 = arith.cmpi sge, %20, %275 : vector<2x4x256xi32>
    %cst_94 = arith.constant 0.000000e+00 : f32
    %277 = vector.broadcast %cst_94 : f32 to vector<2x4x256xf32>
    %278 = arith.select %276, %274, %277 : vector<2x4x256xi1>, vector<2x4x256xf32>
    %279 = vector.extract_strided_slice %2 {offsets = [1, 6, 0, 0], sizes = [1, 1, 8, 4], strides = [1, 1, 1, 1]} : vector<2x9x8x4xf32> to vector<1x1x8x4xf32>
    %280 = vector.shape_cast %279 : vector<1x1x8x4xf32> to vector<8x4xf32>
    %281 = vector.extract_strided_slice %278 {offsets = [0, 0, 0], sizes = [1, 4, 256], strides = [1, 1, 1]} : vector<2x4x256xf32> to vector<1x4x256xf32>
    %282 = vector.shape_cast %281 : vector<1x4x256xf32> to vector<4x256xf32>
    %cst_95 = arith.constant dense<0.000000e+00> : vector<8x256xf32>
    %283 = tpu.matmul %280, %282, %cst_95 {dimension_numbers = #tpu.dot_dimension_numbers<[1], [0], [0], [1], [0, 0, 1, 1], [], []>} : vector<8x4xf32>, vector<4x256xf32>, vector<8x256xf32> -> vector<8x256xf32>
    %284 = arith.addf %269, %283 : vector<8x256xf32>
    %285 = vector.extract_strided_slice %278 {offsets = [1, 0, 0], sizes = [1, 4, 256], strides = [1, 1, 1]} : vector<2x4x256xf32> to vector<1x4x256xf32>
    %286 = vector.shape_cast %285 : vector<1x4x256xf32> to vector<4x256xf32>
    %cst_96 = arith.constant dense<0.000000e+00> : vector<8x256xf32>
    %287 = tpu.matmul %280, %286, %cst_96 {dimension_numbers = #tpu.dot_dimension_numbers<[1], [0], [0], [1], [0, 0, 1, 1], [], []>} : vector<8x4xf32>, vector<4x256xf32>, vector<8x256xf32> -> vector<8x256xf32>
    %288 = arith.addf %273, %287 : vector<8x256xf32>
    %289 = vector.extract_strided_slice %1 {offsets = [0, 0, 33], sizes = [2, 4, 256], strides = [1, 1, 1]} : vector<2x4x290xf32> to vector<2x4x256xf32>
    %290 = vector.extract_strided_slice %2 {offsets = [1, 7, 0, 0], sizes = [1, 1, 8, 4], strides = [1, 1, 1, 1]} : vector<2x9x8x4xf32> to vector<1x1x8x4xf32>
    %291 = vector.shape_cast %290 : vector<1x1x8x4xf32> to vector<8x4xf32>
    %292 = vector.extract_strided_slice %289 {offsets = [0, 0, 0], sizes = [1, 4, 256], strides = [1, 1, 1]} : vector<2x4x256xf32> to vector<1x4x256xf32>
    %293 = vector.shape_cast %292 : vector<1x4x256xf32> to vector<4x256xf32>
    %cst_97 = arith.constant dense<0.000000e+00> : vector<8x256xf32>
    %294 = tpu.matmul %291, %293, %cst_97 {dimension_numbers = #tpu.dot_dimension_numbers<[1], [0], [0], [1], [0, 0, 1, 1], [], []>} : vector<8x4xf32>, vector<4x256xf32>, vector<8x256xf32> -> vector<8x256xf32>
    %295 = arith.addf %284, %294 : vector<8x256xf32>
    %296 = vector.extract_strided_slice %289 {offsets = [1, 0, 0], sizes = [1, 4, 256], strides = [1, 1, 1]} : vector<2x4x256xf32> to vector<1x4x256xf32>
    %297 = vector.shape_cast %296 : vector<1x4x256xf32> to vector<4x256xf32>
    %cst_98 = arith.constant dense<0.000000e+00> : vector<8x256xf32>
    %298 = tpu.matmul %291, %297, %cst_98 {dimension_numbers = #tpu.dot_dimension_numbers<[1], [0], [0], [1], [0, 0, 1, 1], [], []>} : vector<8x4xf32>, vector<4x256xf32>, vector<8x256xf32> -> vector<8x256xf32>
    %299 = arith.addf %288, %298 : vector<8x256xf32>
    %300 = vector.extract_strided_slice %1 {offsets = [0, 0, 34], sizes = [2, 4, 256], strides = [1, 1, 1]} : vector<2x4x290xf32> to vector<2x4x256xf32>
    %c14_i32_99 = arith.constant 14 : i32
    %301 = vector.broadcast %c14_i32_99 : i32 to vector<2x4x256xi32>
    %302 = arith.cmpi sle, %20, %301 : vector<2x4x256xi32>
    %cst_100 = arith.constant 0.000000e+00 : f32
    %303 = vector.broadcast %cst_100 : f32 to vector<2x4x256xf32>
    %304 = arith.select %302, %300, %303 : vector<2x4x256xi1>, vector<2x4x256xf32>
    %305 = vector.extract_strided_slice %2 {offsets = [1, 8, 0, 0], sizes = [1, 1, 8, 4], strides = [1, 1, 1, 1]} : vector<2x9x8x4xf32> to vector<1x1x8x4xf32>
    %306 = vector.shape_cast %305 : vector<1x1x8x4xf32> to vector<8x4xf32>
    %307 = vector.extract_strided_slice %304 {offsets = [0, 0, 0], sizes = [1, 4, 256], strides = [1, 1, 1]} : vector<2x4x256xf32> to vector<1x4x256xf32>
    %308 = vector.shape_cast %307 : vector<1x4x256xf32> to vector<4x256xf32>
    %cst_101 = arith.constant dense<0.000000e+00> : vector<8x256xf32>
    %309 = tpu.matmul %306, %308, %cst_101 {dimension_numbers = #tpu.dot_dimension_numbers<[1], [0], [0], [1], [0, 0, 1, 1], [], []>} : vector<8x4xf32>, vector<4x256xf32>, vector<8x256xf32> -> vector<8x256xf32>
    %310 = arith.addf %295, %309 : vector<8x256xf32>
    %311 = vector.extract_strided_slice %304 {offsets = [1, 0, 0], sizes = [1, 4, 256], strides = [1, 1, 1]} : vector<2x4x256xf32> to vector<1x4x256xf32>
    %312 = vector.shape_cast %311 : vector<1x4x256xf32> to vector<4x256xf32>
    %cst_102 = arith.constant dense<0.000000e+00> : vector<8x256xf32>
    %313 = tpu.matmul %306, %312, %cst_102 {dimension_numbers = #tpu.dot_dimension_numbers<[1], [0], [0], [1], [0, 0, 1, 1], [], []>} : vector<8x4xf32>, vector<4x256xf32>, vector<8x256xf32> -> vector<8x256xf32>
    %314 = arith.addf %299, %313 : vector<8x256xf32>
    %315 = vector.extract_strided_slice %3 {offsets = [1, 0, 0], sizes = [1, 8, 1], strides = [1, 1, 1]} : vector<2x8x1xf32> to vector<1x8x1xf32>
    %316 = vector.shape_cast %315 : vector<1x8x1xf32> to vector<8x1xf32>
    %317 = vector.broadcast %316 : vector<8x1xf32> to vector<8x256xf32>
    %318 = arith.addf %310, %317 : vector<8x256xf32>
    %cst_103 = arith.constant 0.000000e+00 : f32
    %319 = vector.broadcast %cst_103 : f32 to vector<8x256xf32>
    %320 = arith.maximumf %318, %319 : vector<8x256xf32>
    %321 = vector.extract_strided_slice %320 {offsets = [0, 0], sizes = [1, 256], strides = [1, 1]} : vector<8x256xf32> to vector<1x256xf32>
    %c0_104 = arith.constant 0 : index
    %c2048 = arith.constant 2048 : index
    %322 = vector.load %arg9[%c0_104, %c2048] : memref<2x4096xf32, #tpu.memory_space<vmem>>, vector<1x256xf32>
    tpu.vector_store %arg9[%c0_104, %c2048], %321 {strides = array<i32>} : memref<2x4096xf32, #tpu.memory_space<vmem>>, vector<1x256xf32>,
    %323 = vector.extract_strided_slice %320 {offsets = [1, 0], sizes = [1, 256], strides = [1, 1]} : vector<8x256xf32> to vector<1x256xf32>
    %c0_105 = arith.constant 0 : index
    %c2304 = arith.constant 2304 : index
    %324 = vector.load %arg9[%c0_105, %c2304] : memref<2x4096xf32, #tpu.memory_space<vmem>>, vector<1x256xf32>
    tpu.vector_store %arg9[%c0_105, %c2304], %323 {strides = array<i32>} : memref<2x4096xf32, #tpu.memory_space<vmem>>, vector<1x256xf32>,
    %325 = vector.extract_strided_slice %320 {offsets = [2, 0], sizes = [1, 256], strides = [1, 1]} : vector<8x256xf32> to vector<1x256xf32>
    %c0_106 = arith.constant 0 : index
    %c2560 = arith.constant 2560 : index
    %326 = vector.load %arg9[%c0_106, %c2560] : memref<2x4096xf32, #tpu.memory_space<vmem>>, vector<1x256xf32>
    tpu.vector_store %arg9[%c0_106, %c2560], %325 {strides = array<i32>} : memref<2x4096xf32, #tpu.memory_space<vmem>>, vector<1x256xf32>,
    %327 = vector.extract_strided_slice %320 {offsets = [3, 0], sizes = [1, 256], strides = [1, 1]} : vector<8x256xf32> to vector<1x256xf32>
    %c0_107 = arith.constant 0 : index
    %c2816 = arith.constant 2816 : index
    %328 = vector.load %arg9[%c0_107, %c2816] : memref<2x4096xf32, #tpu.memory_space<vmem>>, vector<1x256xf32>
    tpu.vector_store %arg9[%c0_107, %c2816], %327 {strides = array<i32>} : memref<2x4096xf32, #tpu.memory_space<vmem>>, vector<1x256xf32>,
    %329 = vector.extract_strided_slice %320 {offsets = [4, 0], sizes = [1, 256], strides = [1, 1]} : vector<8x256xf32> to vector<1x256xf32>
    %c0_108 = arith.constant 0 : index
    %c3072 = arith.constant 3072 : index
    %330 = vector.load %arg9[%c0_108, %c3072] : memref<2x4096xf32, #tpu.memory_space<vmem>>, vector<1x256xf32>
    tpu.vector_store %arg9[%c0_108, %c3072], %329 {strides = array<i32>} : memref<2x4096xf32, #tpu.memory_space<vmem>>, vector<1x256xf32>,
    %331 = vector.extract_strided_slice %320 {offsets = [5, 0], sizes = [1, 256], strides = [1, 1]} : vector<8x256xf32> to vector<1x256xf32>
    %c0_109 = arith.constant 0 : index
    %c3328 = arith.constant 3328 : index
    %332 = vector.load %arg9[%c0_109, %c3328] : memref<2x4096xf32, #tpu.memory_space<vmem>>, vector<1x256xf32>
    tpu.vector_store %arg9[%c0_109, %c3328], %331 {strides = array<i32>} : memref<2x4096xf32, #tpu.memory_space<vmem>>, vector<1x256xf32>,
    %333 = vector.extract_strided_slice %320 {offsets = [6, 0], sizes = [1, 256], strides = [1, 1]} : vector<8x256xf32> to vector<1x256xf32>
    %c0_110 = arith.constant 0 : index
    %c3584 = arith.constant 3584 : index
    %334 = vector.load %arg9[%c0_110, %c3584] : memref<2x4096xf32, #tpu.memory_space<vmem>>, vector<1x256xf32>
    tpu.vector_store %arg9[%c0_110, %c3584], %333 {strides = array<i32>} : memref<2x4096xf32, #tpu.memory_space<vmem>>, vector<1x256xf32>,
    %335 = vector.extract_strided_slice %320 {offsets = [7, 0], sizes = [1, 256], strides = [1, 1]} : vector<8x256xf32> to vector<1x256xf32>
    %c0_111 = arith.constant 0 : index
    %c3840 = arith.constant 3840 : index
    %336 = vector.load %arg9[%c0_111, %c3840] : memref<2x4096xf32, #tpu.memory_space<vmem>>, vector<1x256xf32>
    tpu.vector_store %arg9[%c0_111, %c3840], %335 {strides = array<i32>} : memref<2x4096xf32, #tpu.memory_space<vmem>>, vector<1x256xf32>,
    %337 = vector.extract_strided_slice %3 {offsets = [1, 0, 0], sizes = [1, 8, 1], strides = [1, 1, 1]} : vector<2x8x1xf32> to vector<1x8x1xf32>
    %338 = vector.shape_cast %337 : vector<1x8x1xf32> to vector<8x1xf32>
    %339 = vector.broadcast %338 : vector<8x1xf32> to vector<8x256xf32>
    %340 = arith.addf %314, %339 : vector<8x256xf32>
    %cst_112 = arith.constant 0.000000e+00 : f32
    %341 = vector.broadcast %cst_112 : f32 to vector<8x256xf32>
    %342 = arith.maximumf %340, %341 : vector<8x256xf32>
    %343 = vector.extract_strided_slice %342 {offsets = [0, 0], sizes = [1, 256], strides = [1, 1]} : vector<8x256xf32> to vector<1x256xf32>
    %c1_113 = arith.constant 1 : index
    %c2048_114 = arith.constant 2048 : index
    %344 = vector.load %arg9[%c1_113, %c2048_114] : memref<2x4096xf32, #tpu.memory_space<vmem>>, vector<1x256xf32>
    tpu.vector_store %arg9[%c1_113, %c2048_114], %343 {strides = array<i32>} : memref<2x4096xf32, #tpu.memory_space<vmem>>, vector<1x256xf32>,
    %345 = vector.extract_strided_slice %342 {offsets = [1, 0], sizes = [1, 256], strides = [1, 1]} : vector<8x256xf32> to vector<1x256xf32>
    %c1_115 = arith.constant 1 : index
    %c2304_116 = arith.constant 2304 : index
    %346 = vector.load %arg9[%c1_115, %c2304_116] : memref<2x4096xf32, #tpu.memory_space<vmem>>, vector<1x256xf32>
    tpu.vector_store %arg9[%c1_115, %c2304_116], %345 {strides = array<i32>} : memref<2x4096xf32, #tpu.memory_space<vmem>>, vector<1x256xf32>,
    %347 = vector.extract_strided_slice %342 {offsets = [2, 0], sizes = [1, 256], strides = [1, 1]} : vector<8x256xf32> to vector<1x256xf32>
    %c1_117 = arith.constant 1 : index
    %c2560_118 = arith.constant 2560 : index
    %348 = vector.load %arg9[%c1_117, %c2560_118] : memref<2x4096xf32, #tpu.memory_space<vmem>>, vector<1x256xf32>
    tpu.vector_store %arg9[%c1_117, %c2560_118], %347 {strides = array<i32>} : memref<2x4096xf32, #tpu.memory_space<vmem>>, vector<1x256xf32>,
    %349 = vector.extract_strided_slice %342 {offsets = [3, 0], sizes = [1, 256], strides = [1, 1]} : vector<8x256xf32> to vector<1x256xf32>
    %c1_119 = arith.constant 1 : index
    %c2816_120 = arith.constant 2816 : index
    %350 = vector.load %arg9[%c1_119, %c2816_120] : memref<2x4096xf32, #tpu.memory_space<vmem>>, vector<1x256xf32>
    tpu.vector_store %arg9[%c1_119, %c2816_120], %349 {strides = array<i32>} : memref<2x4096xf32, #tpu.memory_space<vmem>>, vector<1x256xf32>,
    %351 = vector.extract_strided_slice %342 {offsets = [4, 0], sizes = [1, 256], strides = [1, 1]} : vector<8x256xf32> to vector<1x256xf32>
    %c1_121 = arith.constant 1 : index
    %c3072_122 = arith.constant 3072 : index
    %352 = vector.load %arg9[%c1_121, %c3072_122] : memref<2x4096xf32, #tpu.memory_space<vmem>>, vector<1x256xf32>
    tpu.vector_store %arg9[%c1_121, %c3072_122], %351 {strides = array<i32>} : memref<2x4096xf32, #tpu.memory_space<vmem>>, vector<1x256xf32>,
    %353 = vector.extract_strided_slice %342 {offsets = [5, 0], sizes = [1, 256], strides = [1, 1]} : vector<8x256xf32> to vector<1x256xf32>
    %c1_123 = arith.constant 1 : index
    %c3328_124 = arith.constant 3328 : index
    %354 = vector.load %arg9[%c1_123, %c3328_124] : memref<2x4096xf32, #tpu.memory_space<vmem>>, vector<1x256xf32>
    tpu.vector_store %arg9[%c1_123, %c3328_124], %353 {strides = array<i32>} : memref<2x4096xf32, #tpu.memory_space<vmem>>, vector<1x256xf32>,
    %355 = vector.extract_strided_slice %342 {offsets = [6, 0], sizes = [1, 256], strides = [1, 1]} : vector<8x256xf32> to vector<1x256xf32>
    %c1_125 = arith.constant 1 : index
    %c3584_126 = arith.constant 3584 : index
    %356 = vector.load %arg9[%c1_125, %c3584_126] : memref<2x4096xf32, #tpu.memory_space<vmem>>, vector<1x256xf32>
    tpu.vector_store %arg9[%c1_125, %c3584_126], %355 {strides = array<i32>} : memref<2x4096xf32, #tpu.memory_space<vmem>>, vector<1x256xf32>,
    %357 = vector.extract_strided_slice %342 {offsets = [7, 0], sizes = [1, 256], strides = [1, 1]} : vector<8x256xf32> to vector<1x256xf32>
    %c1_127 = arith.constant 1 : index
    %c3840_128 = arith.constant 3840 : index
    %358 = vector.load %arg9[%c1_127, %c3840_128] : memref<2x4096xf32, #tpu.memory_space<vmem>>, vector<1x256xf32>
    tpu.vector_store %arg9[%c1_127, %c3840_128], %357 {strides = array<i32>} : memref<2x4096xf32, #tpu.memory_space<vmem>>, vector<1x256xf32>,
    %c0_129 = arith.constant 0 : index
    %c0_130 = arith.constant 0 : index
    %359 = vector.load %arg9[%c0_129, %c0_130] : memref<2x4096xf32, #tpu.memory_space<vmem>>, vector<2x4096xf32>
    %c0_131 = arith.constant 0 : index
    %c0_132 = arith.constant 0 : index
    %360 = vector.load %arg4[%c0_131, %c0_132] : memref<32x4096xf32, #tpu.memory_space<vmem>>, vector<32x4096xf32>
    %cst_133 = arith.constant dense<0.000000e+00> : vector<2x32xf32>
    %361 = tpu.matmul %359, %360, %cst_133 {dimension_numbers = #tpu.dot_dimension_numbers<[1], [1], [0], [0], [0, 0, 1, 0], [], []>} : vector<2x4096xf32>, vector<32x4096xf32>, vector<2x32xf32> -> vector<2x32xf32>
    %c0_134 = arith.constant 0 : index
    %c0_135 = arith.constant 0 : index
    %362 = vector.load %arg5[%c0_134, %c0_135] : memref<1x32xf32, #tpu.memory_space<vmem>>, vector<1x32xf32>
    %363 = vector.broadcast %362 : vector<1x32xf32> to vector<2x32xf32>
    %364 = arith.addf %361, %363 : vector<2x32xf32>
    %cst_136 = arith.constant 0.000000e+00 : f32
    %365 = vector.broadcast %cst_136 : f32 to vector<2x32xf32>
    %366 = arith.maximumf %364, %365 : vector<2x32xf32>
    %c0_137 = arith.constant 0 : index
    %c0_138 = arith.constant 0 : index
    %367 = vector.load %arg6[%c0_137, %c0_138] : memref<2x32xf32, #tpu.memory_space<vmem>>, vector<2x32xf32>
    %cst_139 = arith.constant dense<0.000000e+00> : vector<2x2xf32>
    %368 = tpu.matmul %366, %367, %cst_139 {dimension_numbers = #tpu.dot_dimension_numbers<[1], [1], [0], [0], [0, 0, 1, 0], [], []>} : vector<2x32xf32>, vector<2x32xf32>, vector<2x2xf32> -> vector<2x2xf32>
    %c0_140 = arith.constant 0 : index
    %c0_141 = arith.constant 0 : index
    %369 = vector.load %arg7[%c0_140, %c0_141] : memref<1x2xf32, #tpu.memory_space<vmem>>, vector<1x2xf32>
    %370 = vector.broadcast %369 : vector<1x2xf32> to vector<2x2xf32>
    %371 = arith.addf %368, %370 : vector<2x2xf32>
    %c0_142 = arith.constant 0 : index
    %c0_143 = arith.constant 0 : index
    %372 = vector.load %arg8[%c0_142, %c0_143] : memref<2x2xf32, #tpu.memory_space<vmem>>, vector<2x2xf32>
    tpu.vector_store %arg8[%c0_142, %c0_143], %371 {strides = array<i32>} : memref<2x2xf32, #tpu.memory_space<vmem>>, vector<2x2xf32>,
    return
  }
}

</mosaic_0001>

<bundles_post_ra>
// kernel: prenet_forward.1
= control target key start
LH: loop header
LB: loop body
LE: loop exit
PB: predicated region body
PF: predicated region fallthrough
CT: control target
= control target key end

     0   :  { %13 = vsyncpa [#allocation4], 0  ;;  %s6464_s0 = inlined_call_operand.vmem [shape: f32[2,4,290], index: 0, kind: input, shape index: {}]   ;;  %s6465_s1 = inlined_call_operand.vmem [shape: f32[2,4,290], index: 1, kind: input, shape index: {}]   ;;  %s6466_s2 = inlined_call_operand.vmem [shape: f32[2,9,8,4], index: 2, kind: input, shape index: {}]   ;;  %s6467_s3 = inlined_call_operand.vmem [shape: f32[2,8,1], index: 3, kind: input, shape index: {}]   ;;  %s6468_s4 = inlined_call_operand.hbm [shape: f32[32,4096], index: 4, kind: input, shape index: {}]   ;;  %s6469_s5 = inlined_call_operand.vmem [shape: f32[1,32], index: 5, kind: input, shape index: {}]   ;;  %s6470_s6 = inlined_call_operand.vmem [shape: f32[2,32], index: 6, kind: input, shape index: {}]   ;;  %s6471_s7 = inlined_call_operand.vmem [shape: f32[1,2], index: 7, kind: input, shape index: {}]   ;;  %s6472_s8 = inlined_call_operand.hbm [shape: f32[2,2], index: 8, kind: output, shape index: {}]  }
   0x1   :  { %14 = vsyncpa [#allocation5], 0  ;;  %s5626_s27 = smov [#allocation3]   ;;  %s5578_s9 = scalar_lea.hbm %s6468_s4, 16384 }
   0x2   :  { %s28_s28 = sshll.u32 %s5626_s27, 4  ;;  %p5579_p0 = scmp.ne.s32.totalorder %s6468_s4, %s5578_s9  ;;  %s29_s28 = int_to_ptr.vmem [resolvable:$true] %s28_s28 }
   0x3   :  { %p5582_p1 = scmp.lt.u32.totalorder %s5578_s9, %s6468_s4 }
   0x5   :  { %p5584_p2 = pnand %p5582_p1, %p5579_p0 }
   0x7   :  { %5587 = shalt.err (!%p5584_p2)
}
   0x8   :  { %s5588_s14 = scalar_lea.vmem %s29_s28, 16384  ;;  %p5593_p4 = scmp.lt.s32.totalorder %s29_s28, %s29_s28 }
   0x9   :  { %p5589_p3 = scmp.ne.s32.totalorder %s29_s28, %s5588_s14  ;;  %p5594_p5 = scmp.lt.s32.totalorder %s5588_s14, %s5588_s14 }
   0xb   :  { %p5595_p6 = por %p5594_p5, %p5593_p4 }
   0xd   :  { %p5596_p7 = pnand %p5595_p6, %p5589_p3 }
   0xf   :  { %5599 = shalt.err (!%p5596_p7)
}
  0x10   :  { %s5627_s15 = smov 4096   ;;  %s5628_s16 = smov 256  }
  0x11   :  { %34 = dma.hbm_to_vmem [thread:$0]  %s6468_s4, 16384, %s29_s28, [#allocation4], %s5627_s15, %s5627_s15, %s5628_s16  }
  0x12   :  { %5622 = dma.done.wait [#allocation4], 16384  }
  0x13   :  { %5623 = vsyncadd [#allocation4], 4294950912  ;;  %v47_v0 = vld [vmem:[%s6464_s0 + $0x14] sm:$0xf]  ;;  %v45_v1 = vld [vmem:[%s6464_s0 + $0x8] sm:$0xf]  ;;  %v72_v13 = vlaneseq }
  0x14   :  { %s5629_s23 = smov 127   ;;  %v5711_v2 = vld [vmem:[%s6464_s0 + $0xc] sm:$0xff]  ;;  %v5716_v3 = vld [vmem:[%s6464_s0] sm:$0xff]  ;;  %v5630_v4 = vmov 0.0   ;;  %s5631_s0 = smov 126   ;;  %vm118_vm0 = vcmask 1039360  }
  0x15   :  { %286 = vrot.lane.b32.xlu1 %v47_v0, %s5629_s23  ;;  %116 = vrot.lane.b32.xlu0 %v45_v1, %s5629_s23  ;;  %v5726_v5 = vcombine.high %v5711_v2, %v5711_v2  ;;  %v5730_v6 = vcombine.high %v5716_v3, %v5716_v3  ;;  %s5632_s27 = smov 112   ;;  %s5633_s28 = smov 111   ;;  %v5805_v7 = vld [vmem:[%s6465_s1] sm:$0xff]  ;;  %v5818_v9 = vld [vmem:[%s6465_s1 + $0x8] sm:$0xf]  ;;  %v73_v14 = vand.u32 127, %v72_v13 }
  0x16   :  { %194 = vmatprep.mubr.f32.mxu0 %v5630_v4  ;;  %358 = vmatprep.mubr.f32.mxu1 %v5630_v4  ;;  %s5634_s29 = smov 110   ;;  %s5635_s30 = smov 96   ;;  %v5813_v8 = vcombine.high %v5805_v7, %v5805_v7  ;;  %v5823_v10 = vld [vmem:[%s6465_s1 + $0xc] sm:$0xff]  ;;  %v5836_v12 = vld [vmem:[%s6465_s1 + $0x14] sm:$0xf]  ;;  %vm125_vm1 = vcmask 1043456  }
  0x17   :  { %s5636_s9 = smov 95   ;;  %s5637_s10 = smov 94   ;;  %v5831_v11 = vcombine.high %v5823_v10, %v5823_v10  ;;  %v74_v15 = vadd.s32 128, %v73_v14  ;;  %v79_v21 = vand.u32 15, %v73_v14  ;;  %vm456_vm4 = vcmask 1031168   ;;  %v53_v31 = vld [vmem:[%s6466_s2 + $0x8] sm:$0xff] }
  0x18   :  { %vm121_vm5 = vcmask 31744   ;;  %v52_v44 = vld [vmem:[%s6466_s2] sm:$0xff]  ;;  %vm642_vm8 = vcmask 916480   ;;  %v54_v56 = vld [vmem:[%s6466_s2 + $0x10] sm:$0xff]  ;;  %vm822_vm9 = vcmask 908288   ;;  %vm1002_vm10 = vcmask 900096  }
  0x19   :  { %282 = vrot.lane.b32.xlu1 %v5711_v2, %s5629_s23  ;;  %112 = vrot.lane.b32.xlu0 %v5716_v3, %s5629_s23  ;;  %v86_v18 = vand.u32 15, %v74_v15  ;;  %vm5867_vm3 = vcmp.ge.s32.totalorder %v79_v21, 1  ;;  %vm5929_vm7 = vcmp.le.s32.totalorder %v79_v21, 14  ;;  %vm1188_vm11 = vcmask 785408   ;;  %v3768_v45 = vld [vmem:[#allocation3 + $0x300] sm:$0xff] }
  0x1a   :  { %v107_v33 = vsel %vm5867_vm3, %v5716_v3, 0.0  ;;  %v109_v39 = vsel %vm5867_vm3, %v5711_v2, 0.0  ;;  %vm1368_vm12 = vcmask 777216   ;;  %vm1548_vm13 = vcmask 769024  }
  0x1b   :  { %vm5863_vm2 = vcmp.ge.s32.totalorder %v86_v18, 1  ;;  %vm5887_vm6 = vcmp.le.s32.totalorder %v86_v18, 14  ;;  %vm6325_vm14 = vcmp.lt.s32.totalorder %v72_v13, 256  ;;  %vm5112_vm15 = vcmask 261120  }
  0x1c   :  { %v108_v30 = vsel %vm5863_vm2, %v5730_v6, 0.0  ;;  %v110_v37 = vsel %vm5863_vm2, %v5726_v5, 0.0 }
  0x1d   :  { %284 = vrot.lane.b32.xlu1 %v5726_v5, %s5629_s23  ;;  %114 = vrot.lane.b32.xlu0 %v5730_v6, %s5629_s23 }
  0x21   :  { %448 = vrot.lane.b32.xlu1 %v45_v1, %s5631_s0  ;;  %446 = vrot.lane.b32.xlu0 %v5730_v6, %s5631_s0 }
  0x25   :  { %454 = vrot.lane.b32.xlu1 %v47_v0, %s5631_s0  ;;  %452 = vrot.lane.b32.xlu0 %v5726_v5, %s5631_s0 }
  0x29   :  { %450 = vrot.lane.b32.xlu1 %v5711_v2, %s5631_s0  ;;  %444 = vrot.lane.b32.xlu0 %v5716_v3, %s5631_s0 }
  0x2d   :  { %634 = vrot.lane.b32.xlu1 %v45_v1, %s5632_s27  ;;  %632 = vrot.lane.b32.xlu0 %v5730_v6, %s5632_s27 }
  0x31   :  { %640 = vrot.lane.b32.xlu1 %v47_v0, %s5632_s27  ;;  %638 = vrot.lane.b32.xlu0 %v5726_v5, %s5632_s27 }
  0x35   :  { %636 = vrot.lane.b32.xlu1 %v5711_v2, %s5632_s27  ;;  %630 = vrot.lane.b32.xlu0 %v5716_v3, %s5632_s27 }
  0x39   :  { %820 = vrot.lane.b32.xlu1 %v45_v1, %s5633_s28  ;;  %818 = vrot.lane.b32.xlu0 %v5730_v6, %s5633_s28 }
  0x3d   :  { %909 = vrot.lane.b32.xlu1 %v47_v0, %s5633_s28  ;;  %907 = vrot.lane.b32.xlu0 %v5726_v5, %s5633_s28 }
  0x41   :  { %905 = vrot.lane.b32.xlu1 %v5711_v2, %s5633_s28  ;;  %816 = vrot.lane.b32.xlu0 %v5716_v3, %s5633_s28 }
  0x45   :  { %994 = vrot.lane.b32.xlu1 %v45_v1, %s5634_s29  ;;  %992 = vrot.lane.b32.xlu0 %v5730_v6, %s5634_s29 }
  0x49   :  { %1000 = vrot.lane.b32.xlu1 %v47_v0, %s5634_s29  ;;  %998 = vrot.lane.b32.xlu0 %v5726_v5, %s5634_s29 }
  0x4d   :  { %996 = vrot.lane.b32.xlu1 %v5711_v2, %s5634_s29  ;;  %990 = vrot.lane.b32.xlu0 %v5716_v3, %s5634_s29 }
  0x51   :  { %1180 = vrot.lane.b32.xlu1 %v45_v1, %s5635_s30  ;;  %1178 = vrot.lane.b32.xlu0 %v5730_v6, %s5635_s30 }
  0x55   :  { %1186 = vrot.lane.b32.xlu1 %v47_v0, %s5635_s30  ;;  %1184 = vrot.lane.b32.xlu0 %v5726_v5, %s5635_s30 }
  0x59   :  { %1182 = vrot.lane.b32.xlu1 %v5711_v2, %s5635_s30  ;;  %1176 = vrot.lane.b32.xlu0 %v5716_v3, %s5635_s30 }
  0x5d   :  { %1366 = vrot.lane.b32.xlu1 %v45_v1, %s5636_s9  ;;  %1364 = vrot.lane.b32.xlu0 %v5730_v6, %s5636_s9 }
  0x61   :  { %1455 = vrot.lane.b32.xlu1 %v47_v0, %s5636_s9  ;;  %1453 = vrot.lane.b32.xlu0 %v5726_v5, %s5636_s9 }
  0x65   :  { %1451 = vrot.lane.b32.xlu1 %v5711_v2, %s5636_s9  ;;  %1362 = vrot.lane.b32.xlu0 %v5716_v3, %s5636_s9 }
  0x69   :  { %1540 = vrot.lane.b32.xlu1 %v45_v1, %s5637_s10  ;;  %1538 = vrot.lane.b32.xlu0 %v5730_v6, %s5637_s10 }
  0x6d   :  { %1546 = vrot.lane.b32.xlu1 %v47_v0, %s5637_s10  ;;  %1544 = vrot.lane.b32.xlu0 %v5726_v5, %s5637_s10 }
  0x71   :  { %1542 = vrot.lane.b32.xlu1 %v5711_v2, %s5637_s10  ;;  %1536 = vrot.lane.b32.xlu0 %v5716_v3, %s5637_s10  ;;  %v55_v3 = vld [vmem:[%s6466_s2 + $0x18] sm:$0xff] }
  0x75   :  { %1905 = vrot.lane.b32.xlu1 %v5818_v9, %s5629_s23  ;;  %1903 = vrot.lane.b32.xlu0 %v5813_v8, %s5629_s23 }
  0x79   :  { %2072 = vrot.lane.b32.xlu1 %v5836_v12, %s5629_s23  ;;  %2070 = vrot.lane.b32.xlu0 %v5831_v11, %s5629_s23 }
  0x7d   :  { %2068 = vrot.lane.b32.xlu1 %v5823_v10, %s5629_s23  ;;  %1901 = vrot.lane.b32.xlu0 %v5805_v7, %s5629_s23 }
  0x81   :  { %2232 = vrot.lane.b32.xlu1 %v5818_v9, %s5631_s0  ;;  %2230 = vrot.lane.b32.xlu0 %v5813_v8, %s5631_s0 }
  0x85   :  { %2238 = vrot.lane.b32.xlu1 %v5836_v12, %s5631_s0  ;;  %2236 = vrot.lane.b32.xlu0 %v5831_v11, %s5631_s0 }
  0x87   :  { %v287_v16 = vpop.permute.xlu1 %286  ;;  %v117_v17 = vpop.permute.xlu0 %116 }
  0x89   :  { %2234 = vrot.lane.b32.xlu1 %v5823_v10, %s5631_s0  ;;  %2228 = vrot.lane.b32.xlu0 %v5805_v7, %s5631_s0 }
  0x8b   :  { %v283_v19 = vpop.permute.xlu1 %282  ;;  %v113_v20 = vpop.permute.xlu0 %112 }
  0x8d   :  { %2417 = vrot.lane.b32.xlu1 %v5818_v9, %s5632_s27  ;;  %2415 = vrot.lane.b32.xlu0 %v5813_v8, %s5632_s27 }
  0x8f   :  { %v285_v23 = vpop.permute.xlu1 %284  ;;  %v115_v24 = vpop.permute.xlu0 %114 }
  0x90   :  { %v289_v26 = vsel %vm118_vm0, %v285_v23, %v287_v16  ;;  %v120_v27 = vsel %vm118_vm0, %v115_v24, %v117_v17  ;;  %v119_v28 = vsel %vm118_vm0, %v113_v20, %v115_v24  ;;  %v288_v29 = vsel %vm118_vm0, %v283_v19, %v285_v23  ;;  %v56_v23 = vld [vmem:[%s6466_s2 + $0x20] sm:$0xff] }
  0x91   :  { %5212 = vmatprep.subr.msk.mxu1 %vm125_vm1, %v289_v26  ;;  %2423 = vrot.lane.b32.xlu1 %v5836_v12, %s5632_s27 }
  0x92   :  { %2421 = vrot.lane.b32.xlu0 %v5831_v11, %s5632_s27  ;;  %5206 = vmatprep.subr.msk.mxu0 %vm125_vm1, %v120_v27 }
  0x93   :  { %5207 = vmatpush1.msk.msra.mxu0 %vm125_vm1, %v119_v28  ;;  %5213 = vmatpush1.msk.msra.mxu1 %vm125_vm1, %v288_v29  ;;  %v449_v34 = vpop.permute.xlu1 %448  ;;  %v447_v35 = vpop.permute.xlu0 %446 }
  0x94   :  { %v458_v36 = vsel %vm456_vm4, %v447_v35, %v449_v34  ;;  %5209 = vmatprep.subr.msk.mxu0 %vm125_vm1, %v108_v30  ;;  %5208 = vmatmul.mubr.msk.f32.vlgmr.msra.gmra.mrb[0].mxu0 %vm121_vm5, %v53_v31 }
  0x95   :  { %v466_v38 = vsel %vm5887_vm6, %v458_v36, 0.0  ;;  %2419 = vrot.lane.b32.xlu1 %v5823_v10, %s5632_s27  ;;  %5210 = vmatpush1.msk.msra.mxu0 %vm125_vm1, %v107_v33 }
  0x96   :  { %2413 = vrot.lane.b32.xlu0 %v5805_v7, %s5632_s27  ;;  %5214 = vmatmul.mubr.msk.f32.vlgmr.msra.gmra.mrb[0].mxu1 %vm121_vm5, %v53_v31  ;;  %v5638_v31 = vmov 0  }
  0x97   :  { %5218 = vmatprep.subr.msk.mxu0 %vm125_vm1, %v466_v38  ;;  %v455_v40 = vpop.permute.xlu1 %454  ;;  %v453_v41 = vpop.permute.xlu0 %452  ;;  %5215 = vmatprep.subr.msk.mxu1 %vm125_vm1, %v110_v37 }
  0x98   :  { %v460_v42 = vsel %vm456_vm4, %v453_v41, %v455_v40  ;;  %5216 = vmatpush1.msk.msra.mxu1 %vm125_vm1, %v109_v39  ;;  %435 = vmatprep.mubr.f32.mxu1 %v5630_v4  ;;  %v57_v39 = vld [vmem:[%s6466_s2 + $0x28] sm:$0xff] }
  0x99   :  { %v468_v43 = vsel %vm5887_vm6, %v460_v42, 0.0  ;;  %2602 = vrot.lane.b32.xlu1 %v5818_v9, %s5633_s28  ;;  %274 = vmatprep.mubr.f32.mxu0 %v5630_v4 }
  0x9a   :  { %2600 = vrot.lane.b32.xlu0 %v5813_v8, %s5633_s28  ;;  %5221 = vmatprep.subr.msk.mxu1 %vm125_vm1, %v468_v43 }
  0x9b   :  { %v451_v46 = vpop.permute.xlu1 %450  ;;  %v445_v47 = vpop.permute.xlu0 %444  ;;  %5564 = vset.pattern.permute.xlu0 %v5638_v31  ;;  %5565 = vset.pattern.permute.xlu1 %v5638_v31 }
  0x9c   :  { %v459_v48 = vsel %vm456_vm4, %v451_v46, %v453_v41  ;;  %v457_v49 = vsel %vm456_vm4, %v445_v47, %v447_v35  ;;  %5211 = vmatmul.mubr.msk.f32.vlgmr.msra.gmra.mrb[0].mxu0 %vm121_vm5, %v52_v44 }
  0x9d   :  { %v467_v50 = vsel %vm5929_vm7, %v459_v48, 0.0  ;;  %v465_v51 = vsel %vm5929_vm7, %v457_v49, 0.0  ;;  %2690 = vrot.lane.b32.xlu1 %v5836_v12, %s5633_s28  ;;  %542 = vmatprep.mubr.f32.mxu0 %v5630_v4 }
  0x9e   :  { %2688 = vrot.lane.b32.xlu0 %v5831_v11, %s5633_s28  ;;  %5217 = vmatmul.mubr.msk.f32.vlgmr.msra.gmra.mrb[0].mxu1 %vm121_vm5, %v52_v44 }
  0x9f   :  { %5219 = vmatpush1.msk.msra.mxu0 %vm125_vm1, %v465_v51  ;;  %5222 = vmatpush1.msk.msra.mxu1 %vm125_vm1, %v467_v50  ;;  %v635_v52 = vpop.permute.xlu1 %634  ;;  %v633_v53 = vpop.permute.xlu0 %632 }
  0xa0   :  { %v644_v54 = vsel %vm642_vm8, %v633_v53, %v635_v52  ;;  %621 = vmatprep.mubr.f32.mxu1 %v5630_v4 }
  0xa1   :  { %v652_v55 = vsel %vm5863_vm2, %v644_v54, 0.0  ;;  %2686 = vrot.lane.b32.xlu1 %v5823_v10, %s5633_s28 }
  0xa2   :  { %2598 = vrot.lane.b32.xlu0 %v5805_v7, %s5633_s28  ;;  %5224 = vmatprep.subr.msk.mxu0 %vm125_vm1, %v652_v55  ;;  %v58_v55 = vld [vmem:[%s6466_s2 + $0x30] sm:$0xff] }
  0xa3   :  { %v641_v57 = vpop.permute.xlu1 %640  ;;  %v639_v58 = vpop.permute.xlu0 %638 }
  0xa4   :  { %v646_v59 = vsel %vm642_vm8, %v639_v58, %v641_v57  ;;  %5220 = vmatmul.mubr.msk.f32.vlgmr.msra.gmra.mrb[0].mxu0 %vm121_vm5, %v54_v56 }
  0xa5   :  { %v654_v60 = vsel %vm5863_vm2, %v646_v59, 0.0  ;;  %2775 = vrot.lane.b32.xlu1 %v5818_v9, %s5634_s29  ;;  %728 = vmatprep.mubr.f32.mxu0 %v5630_v4 }
  0xa6   :  { %2773 = vrot.lane.b32.xlu0 %v5813_v8, %s5634_s29  ;;  %5227 = vmatprep.subr.msk.mxu1 %vm125_vm1, %v654_v60 }
  0xa7   :  { %v637_v61 = vpop.permute.xlu1 %636  ;;  %v631_v62 = vpop.permute.xlu0 %630  ;;  %5223 = vmatmul.mubr.msk.f32.vlgmr.msra.gmra.mrb[0].mxu1 %vm121_vm5, %v54_v56 }
  0xa8   :  { %v645_v63 = vsel %vm642_vm8, %v637_v61, %v639_v58  ;;  %v643_v0 = vsel %vm642_vm8, %v631_v62, %v633_v53  ;;  %807 = vmatprep.mubr.f32.mxu1 %v5630_v4  ;;  %v70_v62 = vld [vmem:[%s6467_s3] sm:$0xff] }
  0xa9   :  { %v653_v1 = vsel %vm5867_vm3, %v645_v63, 0.0  ;;  %v651_v2 = vsel %vm5867_vm3, %v643_v0, 0.0  ;;  %2781 = vrot.lane.b32.xlu1 %v5836_v12, %s5634_s29 }
  0xaa   :  { %2779 = vrot.lane.b32.xlu0 %v5831_v11, %s5634_s29  ;;  %5225 = vmatpush1.msk.msra.mxu0 %vm125_vm1, %v651_v2  ;;  %v59_v2 = vld [vmem:[%s6466_s2 + $0x38] sm:$0xff] }
  0xab   :  { %5228 = vmatpush1.msk.msra.mxu1 %vm125_vm1, %v653_v1  ;;  %v821_v5 = vpop.permute.xlu1 %820  ;;  %v819_v6 = vpop.permute.xlu0 %818 }
  0xac   :  { %v824_v14 = vsel %vm822_vm9, %v819_v6, %v821_v5  ;;  %5226 = vmatmul.mubr.msk.f32.vlgmr.msra.gmra.mrb[0].mxu0 %vm121_vm5, %v55_v3 }
  0xad   :  { %2777 = vrot.lane.b32.xlu1 %v5823_v10, %s5634_s29  ;;  %5230 = vmatprep.subr.msk.mxu0 %vm125_vm1, %v824_v14 }
  0xae   :  { %2771 = vrot.lane.b32.xlu0 %v5805_v7, %s5634_s29  ;;  %896 = vmatprep.mubr.f32.mxu0 %v5630_v4 }
  0xaf   :  { %v910_v15 = vpop.permute.xlu1 %909  ;;  %v908_v16 = vpop.permute.xlu0 %907  ;;  %5229 = vmatmul.mubr.msk.f32.vlgmr.msra.gmra.mrb[0].mxu1 %vm121_vm5, %v55_v3 }
  0xb0   :  { %v912_v17 = vsel %vm822_vm9, %v908_v16, %v910_v15  ;;  %981 = vmatprep.mubr.f32.mxu1 %v5630_v4 }
  0xb1   :  { %2960 = vrot.lane.b32.xlu1 %v5818_v9, %s5635_s30  ;;  %5233 = vmatprep.subr.msk.mxu1 %vm125_vm1, %v912_v17 }
  0xb2   :  { %2958 = vrot.lane.b32.xlu0 %v5813_v8, %s5635_s30 }
  0xb3   :  { %v906_v18 = vpop.permute.xlu1 %905  ;;  %v817_v19 = vpop.permute.xlu0 %816 }
  0xb4   :  { %v911_v20 = vsel %vm822_vm9, %v906_v18, %v908_v16  ;;  %v823_v21 = vsel %vm822_vm9, %v817_v19, %v819_v6 }
  0xb5   :  { %2966 = vrot.lane.b32.xlu1 %v5836_v12, %s5635_s30  ;;  %5231 = vmatpush1.msk.msra.mxu0 %vm125_vm1, %v823_v21 }
  0xb6   :  { %2964 = vrot.lane.b32.xlu0 %v5831_v11, %s5635_s30  ;;  %5234 = vmatpush1.msk.msra.mxu1 %vm125_vm1, %v911_v20 }
  0xb7   :  { %v995_v24 = vpop.permute.xlu1 %994  ;;  %v993_v26 = vpop.permute.xlu0 %992  ;;  %5232 = vmatmul.mubr.msk.f32.vlgmr.msra.gmra.mrb[0].mxu0 %vm121_vm5, %v56_v23  ;;  %5235 = vmatmul.mubr.msk.f32.vlgmr.msra.gmra.mrb[0].mxu1 %vm121_vm5, %v56_v23 }
  0xb8   :  { %v1004_v27 = vsel %vm1002_vm10, %v993_v26, %v995_v24  ;;  %1088 = vmatprep.mubr.f32.mxu0 %v5630_v4  ;;  %1167 = vmatprep.mubr.f32.mxu1 %v5630_v4 }
  0xb9   :  { %v1012_v28 = vsel %vm5887_vm6, %v1004_v27, 0.0  ;;  %2962 = vrot.lane.b32.xlu1 %v5823_v10, %s5635_s30  ;;  %v60_v27 = vld [vmem:[%s6466_s2 + $0x40] sm:$0xff] }
  0xba   :  { %2956 = vrot.lane.b32.xlu0 %v5805_v7, %s5635_s30  ;;  %5236 = vmatprep.subr.msk.mxu0 %vm125_vm1, %v1012_v28 }
  0xbb   :  { %v1001_v29 = vpop.permute.xlu1 %1000  ;;  %v999_v30 = vpop.permute.xlu0 %998 }
  0xbc   :  { %v1006_v33 = vsel %vm1002_vm10, %v999_v30, %v1001_v29 }
  0xbd   :  { %v1014_v34 = vsel %vm5887_vm6, %v1006_v33, 0.0  ;;  %3145 = vrot.lane.b32.xlu1 %v5818_v9, %s5636_s9 }
  0xbe   :  { %3143 = vrot.lane.b32.xlu0 %v5813_v8, %s5636_s9  ;;  %5239 = vmatprep.subr.msk.mxu1 %vm125_vm1, %v1014_v34 }
  0xbf   :  { %v997_v35 = vpop.permute.xlu1 %996  ;;  %v991_v36 = vpop.permute.xlu0 %990 }
  0xc0   :  { %v1005_v37 = vsel %vm1002_vm10, %v997_v35, %v999_v30  ;;  %v1003_v38 = vsel %vm1002_vm10, %v991_v36, %v993_v26 }
  0xc1   :  { %v1013_v40 = vsel %vm5929_vm7, %v1005_v37, 0.0  ;;  %v1011_v41 = vsel %vm5929_vm7, %v1003_v38, 0.0  ;;  %3233 = vrot.lane.b32.xlu1 %v5836_v12, %s5636_s9 }
  0xc2   :  { %3231 = vrot.lane.b32.xlu0 %v5831_v11, %s5636_s9  ;;  %5237 = vmatpush1.msk.msra.mxu0 %vm125_vm1, %v1011_v41 }
  0xc3   :  { %5240 = vmatpush1.msk.msra.mxu1 %vm125_vm1, %v1013_v40  ;;  %v1181_v42 = vpop.permute.xlu1 %1180  ;;  %v1179_v43 = vpop.permute.xlu0 %1178  ;;  %5238 = vmatmul.mubr.msk.f32.vlgmr.msra.gmra.mrb[0].mxu0 %vm121_vm5, %v57_v39  ;;  %v62_v40 = vld [vmem:[%s6466_s2 + $0x50] sm:$0xff] }
  0xc4   :  { %v1190_v44 = vsel %vm1188_vm11, %v1179_v43, %v1181_v42  ;;  %5241 = vmatmul.mubr.msk.f32.vlgmr.msra.gmra.mrb[0].mxu1 %vm121_vm5, %v57_v39  ;;  %1274 = vmatprep.mubr.f32.mxu0 %v5630_v4  ;;  %v1897_v39 = vsel %vm5863_vm2, %v5813_v8, 0.0 }
  0xc5   :  { %v1198_v46 = vsel %vm5863_vm2, %v1190_v44, 0.0  ;;  %3229 = vrot.lane.b32.xlu1 %v5823_v10, %s5636_s9  ;;  %1353 = vmatprep.mubr.f32.mxu1 %v5630_v4  ;;  %v1898_v44 = vsel %vm5867_vm3, %v5823_v10, 0.0 }
  0xc6   :  { %3141 = vrot.lane.b32.xlu0 %v5805_v7, %s5636_s9  ;;  %5242 = vmatprep.subr.msk.mxu0 %vm125_vm1, %v1198_v46 }
  0xc7   :  { %v1187_v47 = vpop.permute.xlu1 %1186  ;;  %v1185_v48 = vpop.permute.xlu0 %1184 }
  0xc8   :  { %v1192_v49 = vsel %vm1188_vm11, %v1185_v48, %v1187_v47 }
  0xc9   :  { %v1200_v50 = vsel %vm5863_vm2, %v1192_v49, 0.0  ;;  %3318 = vrot.lane.b32.xlu1 %v5818_v9, %s5637_s10  ;;  %v61_v49 = vld [vmem:[%s6466_s2 + $0x48] sm:$0xff] }
  0xca   :  { %3316 = vrot.lane.b32.xlu0 %v5813_v8, %s5637_s10  ;;  %5245 = vmatprep.subr.msk.mxu1 %vm125_vm1, %v1200_v50  ;;  %v1899_v8 = vsel %vm5863_vm2, %v5831_v11, 0.0 }
  0xcb   :  { %v1183_v51 = vpop.permute.xlu1 %1182  ;;  %v1177_v52 = vpop.permute.xlu0 %1176 }
  0xcc   :  { %v1191_v53 = vsel %vm1188_vm11, %v1183_v51, %v1185_v48  ;;  %v1189_v54 = vsel %vm1188_vm11, %v1177_v52, %v1179_v43  ;;  %v1896_v43 = vsel %vm5867_vm3, %v5805_v7, 0.0 }
  0xcd   :  { %v1199_v56 = vsel %vm5867_vm3, %v1191_v53, 0.0  ;;  %v1197_v9 = vsel %vm5867_vm3, %v1189_v54, 0.0  ;;  %3324 = vrot.lane.b32.xlu1 %v5836_v12, %s5637_s10  ;;  %v71_v12 = vld [vmem:[%s6467_s3 + $0x8] sm:$0xff] }
  0xce   :  { %3322 = vrot.lane.b32.xlu0 %v5831_v11, %s5637_s10  ;;  %5243 = vmatpush1.msk.msra.mxu0 %vm125_vm1, %v1197_v9 }
  0xcf   :  { %5246 = vmatpush1.msk.msra.mxu1 %vm125_vm1, %v1199_v56  ;;  %v1367_v57 = vpop.permute.xlu1 %1366  ;;  %v1365_v58 = vpop.permute.xlu0 %1364  ;;  %5244 = vmatmul.mubr.msk.f32.vlgmr.msra.gmra.mrb[0].mxu0 %vm121_vm5, %v58_v55 }
  0xd0   :  { %v1370_v59 = vsel %vm1368_vm12, %v1365_v58, %v1367_v57  ;;  %5247 = vmatmul.mubr.msk.f32.vlgmr.msra.gmra.mrb[0].mxu1 %vm121_vm5, %v58_v55  ;;  %1442 = vmatprep.mubr.f32.mxu0 %v5630_v4 }
  0xd1   :  { %3320 = vrot.lane.b32.xlu1 %v5823_v10, %s5637_s10  ;;  %5248 = vmatprep.subr.msk.mxu0 %vm125_vm1, %v1370_v59  ;;  %v63_v59 = vld [vmem:[%s6466_s2 + $0x58] sm:$0xff] }
  0xd2   :  { %3314 = vrot.lane.b32.xlu0 %v5805_v7, %s5637_s10  ;;  %1527 = vmatprep.mubr.f32.mxu1 %v5630_v4 }
  0xd3   :  { %v1456_v60 = vpop.permute.xlu1 %1455  ;;  %v1454_v61 = vpop.permute.xlu0 %1453 }
  0xd4   :  { %v1458_v63 = vsel %vm1368_vm12, %v1454_v61, %v1456_v60 }
  0xd5   :  { %5251 = vmatprep.subr.msk.mxu1 %vm125_vm1, %v1458_v63  ;;  %3501 = vperm.xlu1 %5565, %v71_v12  }
  0xd6   :  { %1724 = vperm.xlu0 %5564, %v70_v62  }
  0xd7   :  { %v1452_v0 = vpop.permute.xlu1 %1451  ;;  %v1363_v1 = vpop.permute.xlu0 %1362 }
  0xd8   :  { %v1457_v3 = vsel %vm1368_vm12, %v1452_v0, %v1454_v61  ;;  %v1369_v5 = vsel %vm1368_vm12, %v1363_v1, %v1365_v58 }
  0xd9   :  { %5249 = vmatpush1.msk.msra.mxu0 %vm125_vm1, %v1369_v5  ;;  %5252 = vmatpush1.msk.msra.mxu1 %vm125_vm1, %v1457_v3  ;;  %v64_v5 = vld [vmem:[%s6466_s2 + $0x60] sm:$0xff] }
  0xda   :  { %5253 = vmatmul.mubr.msk.f32.vlgmr.msra.gmra.mrb[0].mxu1 %vm121_vm5, %v59_v2  ;;  %5250 = vmatmul.mubr.msk.f32.vlgmr.msra.gmra.mrb[0].mxu0 %vm121_vm5, %v59_v2 }
  0xdb   :  { %v1541_v6 = vpop.permute.xlu1 %1540  ;;  %v1539_v14 = vpop.permute.xlu0 %1538  ;;  %1634 = vmatprep.mubr.f32.mxu0 %v5630_v4  ;;  %1713 = vmatprep.mubr.f32.mxu1 %v5630_v4 }
  0xdc   :  { %v1550_v15 = vsel %vm1548_vm13, %v1539_v14, %v1541_v6 }
  0xdd   :  { %v1558_v16 = vsel %vm5887_vm6, %v1550_v15, 0.0 }
  0xde   :  { %5254 = vmatprep.subr.msk.mxu0 %vm125_vm1, %v1558_v16 }
  0xdf   :  { %v1547_v17 = vpop.permute.xlu1 %1546  ;;  %v1545_v18 = vpop.permute.xlu0 %1544 }
  0xe0   :  { %v1552_v19 = vsel %vm1548_vm13, %v1545_v18, %v1547_v17 }
  0xe1   :  { %v1560_v20 = vsel %vm5887_vm6, %v1552_v19, 0.0 }
  0xe2   :  { %5257 = vmatprep.subr.msk.mxu1 %vm125_vm1, %v1560_v20 }
  0xe3   :  { %v1543_v21 = vpop.permute.xlu1 %1542  ;;  %v1537_v23 = vpop.permute.xlu0 %1536 }
  0xe4   :  { %v1551_v24 = vsel %vm1548_vm13, %v1543_v21, %v1545_v18  ;;  %v1549_v26 = vsel %vm1548_vm13, %v1537_v23, %v1539_v14 }
  0xe5   :  { %v1559_v28 = vsel %vm5929_vm7, %v1551_v24, 0.0  ;;  %v1557_v29 = vsel %vm5929_vm7, %v1549_v26, 0.0  ;;  %v65_v24 = vld [vmem:[%s6466_s2 + $0x68] sm:$0xff] }
  0xe6   :  { %5255 = vmatpush1.msk.msra.mxu0 %vm125_vm1, %v1557_v29  ;;  %5258 = vmatpush1.msk.msra.mxu1 %vm125_vm1, %v1559_v28 }
  0xe7   :  { %v1906_v30 = vpop.permute.xlu1 %1905  ;;  %5259 = vmatmul.mubr.msk.f32.vlgmr.msra.gmra.mrb[0].mxu1 %vm121_vm5, %v60_v27  ;;  %v1904_v31 = vpop.permute.xlu0 %1903  ;;  %5256 = vmatmul.mubr.msk.f32.vlgmr.msra.gmra.mrb[0].mxu0 %vm121_vm5, %v60_v27 }
  0xe8   :  { %v1908_v33 = vsel %vm118_vm0, %v1904_v31, %v1906_v30  ;;  %1980 = vmatprep.mubr.f32.mxu0 %v5630_v4  ;;  %2144 = vmatprep.mubr.f32.mxu1 %v5630_v4 }
  0xe9   :  { %5260 = vmatprep.subr.msk.mxu0 %vm125_vm1, %v1908_v33 }
  0xeb   :  { %v2073_v34 = vpop.permute.xlu1 %2072  ;;  %v2071_v35 = vpop.permute.xlu0 %2070 }
  0xec   :  { %v2075_v36 = vsel %vm118_vm0, %v2071_v35, %v2073_v34 }
  0xed   :  { %5266 = vmatprep.subr.msk.mxu1 %vm125_vm1, %v2075_v36 }
  0xef   :  { %v2069_v37 = vpop.permute.xlu1 %2068  ;;  %v1902_v38 = vpop.permute.xlu0 %1901 }
  0xf0   :  { %v2074_v41 = vsel %vm118_vm0, %v2069_v37, %v2071_v35  ;;  %v1907_v42 = vsel %vm118_vm0, %v1902_v38, %v1904_v31  ;;  %vm5641_vm0 = vmmov 0  }
  0xf1   :  { %5261 = vmatpush1.msk.msra.mxu0 %vm125_vm1, %v1907_v42  ;;  %5267 = vmatpush1.msk.msra.mxu1 %vm125_vm1, %v2074_v41  ;;  %v66_v41 = vld [vmem:[%s6466_s2 + $0x70] sm:$0xff] }
  0xf2   :  { %5263 = vmatprep.subr.msk.mxu0 %vm125_vm1, %v1897_v39  ;;  %5262 = vmatmul.mubr.msk.f32.vlgmr.msra.gmra.mrb[2].mxu0 %vm121_vm5, %v62_v40 }
  0xf3   :  { %v2233_v46 = vpop.permute.xlu1 %2232  ;;  %v2231_v47 = vpop.permute.xlu0 %2230  ;;  %5264 = vmatpush1.msk.msra.mxu0 %vm125_vm1, %v1896_v43  ;;  %5268 = vmatmul.mubr.msk.f32.vlgmr.msra.gmra.mrb[2].mxu1 %vm121_vm5, %v62_v40 }
  0xf4   :  { %v2241_v7 = vsel %vm456_vm4, %v2231_v47, %v2233_v46  ;;  %5269 = vmatprep.subr.msk.mxu1 %vm125_vm1, %v1899_v8  ;;  %2060 = vmatprep.mubr.f32.mxu0 %v5630_v4 }
  0xf5   :  { %v2249_v11 = vsel %vm5887_vm6, %v2241_v7, 0.0  ;;  %5270 = vmatpush1.msk.msra.mxu1 %vm125_vm1, %v1898_v44  ;;  %2221 = vmatprep.mubr.f32.mxu1 %v5630_v4 }
  0xf6   :  { %5272 = vmatprep.subr.msk.mxu0 %vm125_vm1, %v2249_v11 }
  0xf7   :  { %v2239_v10 = vpop.permute.xlu1 %2238  ;;  %v2237_v48 = vpop.permute.xlu0 %2236 }
  0xf8   :  { %v2243_v50 = vsel %vm456_vm4, %v2237_v48, %v2239_v10 }
  0xf9   :  { %v2251_v51 = vsel %vm5887_vm6, %v2243_v50, 0.0 }
  0xfa   :  { %5275 = vmatprep.subr.msk.mxu1 %vm125_vm1, %v2251_v51  ;;  %5265 = vmatmul.mubr.msk.f32.vlgmr.msra.gmra.mrb[2].mxu0 %vm121_vm5, %v61_v49 }
  0xfb   :  { %v2235_v52 = vpop.permute.xlu1 %2234  ;;  %v2229_v53 = vpop.permute.xlu0 %2228  ;;  %5271 = vmatmul.mubr.msk.f32.vlgmr.msra.gmra.mrb[2].mxu1 %vm121_vm5, %v61_v49  ;;  %2325 = vmatprep.mubr.f32.mxu0 %v5630_v4 }
  0xfc   :  { %v2242_v54 = vsel %vm456_vm4, %v2235_v52, %v2237_v48  ;;  %v2240_v55 = vsel %vm456_vm4, %v2229_v53, %v2231_v47  ;;  %2404 = vmatprep.mubr.f32.mxu1 %v5630_v4  ;;  %v67_v53 = vld [vmem:[%s6466_s2 + $0x78] sm:$0xff] }
  0xfd   :  { %v2250_v56 = vsel %vm5929_vm7, %v2242_v54, 0.0  ;;  %v2248_v9 = vsel %vm5929_vm7, %v2240_v55, 0.0 }
  0xfe   :  { %5273 = vmatpush1.msk.msra.mxu0 %vm125_vm1, %v2248_v9  ;;  %5276 = vmatpush1.msk.msra.mxu1 %vm125_vm1, %v2250_v56 }
  0xff   :  { %v2418_v57 = vpop.permute.xlu1 %2417  ;;  %v2416_v58 = vpop.permute.xlu0 %2415 }
 0x100   :  { %v2426_v12 = vsel %vm642_vm8, %v2416_v58, %v2418_v57 }
 0x101   :  { %v2434_v60 = vsel %vm5863_vm2, %v2426_v12, 0.0 }
 0x102   :  { %5278 = vmatprep.subr.msk.mxu0 %vm125_vm1, %v2434_v60  ;;  %5274 = vmatmul.mubr.msk.f32.vlgmr.msra.gmra.mrb[2].mxu0 %vm121_vm5, %v63_v59  ;;  %v68_v60 = vld [vmem:[%s6466_s2 + $0x80] sm:$0xff] }
 0x103   :  { %v2424_v61 = vpop.permute.xlu1 %2423  ;;  %5277 = vmatmul.mubr.msk.f32.vlgmr.msra.gmra.mrb[2].mxu1 %vm121_vm5, %v63_v59  ;;  %2510 = vmatprep.mubr.f32.mxu0 %v5630_v4 }
 0x104   :  { %v2422_v62 = vpop.permute.xlu0 %2421  ;;  %2589 = vmatprep.mubr.f32.mxu1 %v5630_v4 }
 0x105   :  { %v2428_v63 = vsel %vm642_vm8, %v2422_v62, %v2424_v61 }
 0x106   :  { %v2436_v0 = vsel %vm5863_vm2, %v2428_v63, 0.0 }
 0x107   :  { %5281 = vmatprep.subr.msk.mxu1 %vm125_vm1, %v2436_v0  ;;  %v2420_v1 = vpop.permute.xlu1 %2419 }
 0x108   :  { %v2427_v2 = vsel %vm642_vm8, %v2420_v1, %v2422_v62  ;;  %v2414_v3 = vpop.permute.xlu0 %2413 }
 0x109   :  { %v2435_v6 = vsel %vm5867_vm3, %v2427_v2, 0.0  ;;  %v2425_v14 = vsel %vm642_vm8, %v2414_v3, %v2416_v58 }
 0x10a   :  { %v2433_v15 = vsel %vm5867_vm3, %v2425_v14, 0.0  ;;  %5282 = vmatpush1.msk.msra.mxu1 %vm125_vm1, %v2435_v6 }
 0x10b   :  { %5279 = vmatpush1.msk.msra.mxu0 %vm125_vm1, %v2433_v15  ;;  %v2603_v16 = vpop.permute.xlu1 %2602  ;;  %5283 = vmatmul.mubr.msk.f32.vlgmr.msra.gmra.mrb[2].mxu1 %vm121_vm5, %v64_v5 }
 0x10c   :  { %v2601_v17 = vpop.permute.xlu0 %2600  ;;  %5280 = vmatmul.mubr.msk.f32.vlgmr.msra.gmra.mrb[2].mxu0 %vm121_vm5, %v64_v5  ;;  %2762 = vmatprep.mubr.f32.mxu1 %v5630_v4 }
 0x10d   :  { %v2605_v18 = vsel %vm822_vm9, %v2601_v17, %v2603_v16  ;;  %2677 = vmatprep.mubr.f32.mxu0 %v5630_v4  ;;  %v3673_v16 = vld [vmem:[#allocation3 + $0x8] sm:$0xff] }
 0x10e   :  { %5284 = vmatprep.subr.msk.mxu0 %vm125_vm1, %v2605_v18 }
 0x10f   :  { %v2691_v19 = vpop.permute.xlu1 %2690 }
 0x110   :  { %v2689_v20 = vpop.permute.xlu0 %2688 }
 0x111   :  { %v2693_v21 = vsel %vm822_vm9, %v2689_v20, %v2691_v19 }
 0x112   :  { %5287 = vmatprep.subr.msk.mxu1 %vm125_vm1, %v2693_v21  ;;  %v69_v21 = vld [vmem:[%s6466_s2 + $0x88] sm:$0xff] }
 0x113   :  { %v2687_v23 = vpop.permute.xlu1 %2686 }
 0x114   :  { %v2692_v26 = vsel %vm822_vm9, %v2687_v23, %v2689_v20  ;;  %v2599_v27 = vpop.permute.xlu0 %2598 }
 0x115   :  { %v2604_v28 = vsel %vm822_vm9, %v2599_v27, %v2601_v17  ;;  %5288 = vmatpush1.msk.msra.mxu1 %vm125_vm1, %v2692_v26  ;;  %v3705_v17 = vld [vmem:[#allocation3 + $0x108] sm:$0xff]  ;;  %v3672_v27 = vld [vmem:[#allocation3] sm:$0xff] }
 0x116   :  { %5285 = vmatpush1.msk.msra.mxu0 %vm125_vm1, %v2604_v28  ;;  %5289 = vmatmul.mubr.msk.f32.vlgmr.msra.gmra.mrb[2].mxu1 %vm121_vm5, %v65_v24  ;;  %v5325_v23 = vpack.c.bf16 %v3705_v17, %v3673_v16  ;;  %v3704_v28 = vld [vmem:[#allocation3 + $0x100] sm:$0xff]  ;;  %v3783_v17 = vld [vmem:[#allocation3 + $0x378] sm:$0xff] }
 0x117   :  { %v2776_v29 = vpop.permute.xlu1 %2775  ;;  %5286 = vmatmul.mubr.msk.f32.vlgmr.msra.gmra.mrb[2].mxu0 %vm121_vm5, %v65_v24  ;;  %2947 = vmatprep.mubr.f32.mxu1 %v5630_v4 }
 0x118   :  { %v2774_v30 = vpop.permute.xlu0 %2773  ;;  %2868 = vmatprep.mubr.f32.mxu0 %v5630_v4 }
 0x119   :  { %v2784_v31 = vsel %vm1002_vm10, %v2774_v30, %v2776_v29  ;;  %v5327_v29 = vpack.c.bf16 %v3704_v28, %v3672_v27 }
 0x11a   :  { %v2792_v33 = vsel %vm5887_vm6, %v2784_v31, 0.0  ;;  %v3769_v31 = vld [vmem:[#allocation3 + $0x308] sm:$0xff] }
 0x11b   :  { %5290 = vmatprep.subr.msk.mxu0 %vm125_vm1, %v2792_v33  ;;  %v2782_v34 = vpop.permute.xlu1 %2781 }
 0x11c   :  { %v2780_v35 = vpop.permute.xlu0 %2779 }
 0x11d   :  { %v2786_v36 = vsel %vm1002_vm10, %v2780_v35, %v2782_v34  ;;  %v3736_v34 = vld [vmem:[#allocation3 + $0x200] sm:$0xff] }
 0x11e   :  { %v2794_v37 = vsel %vm5887_vm6, %v2786_v36, 0.0  ;;  %v3675_v36 = vld [vmem:[#allocation3 + $0x18] sm:$0xff] }
 0x11f   :  { %5293 = vmatprep.subr.msk.mxu1 %vm125_vm1, %v2794_v37  ;;  %v2778_v38 = vpop.permute.xlu1 %2777  ;;  %v3707_v37 = vld [vmem:[#allocation3 + $0x118] sm:$0xff] }
 0x120   :  { %v2785_v39 = vsel %vm1002_vm10, %v2778_v38, %v2780_v35  ;;  %v2772_v40 = vpop.permute.xlu0 %2771  ;;  %v5331_v35 = vpack.c.bf16 %v3768_v45, %v3736_v34  ;;  %v5333_v38 = vpack.c.bf16 %v3707_v37, %v3675_v36 }
 0x121   :  { %v2793_v42 = vsel %vm5929_vm7, %v2785_v39, 0.0  ;;  %v2783_v43 = vsel %vm1002_vm10, %v2772_v40, %v2774_v30  ;;  %v3737_v30 = vld [vmem:[#allocation3 + $0x208] sm:$0xff] }
 0x122   :  { %v2791_v8 = vsel %vm5929_vm7, %v2783_v43, 0.0  ;;  %5294 = vmatpush1.msk.msra.mxu1 %vm125_vm1, %v2793_v42  ;;  %v5329_v33 = vpack.c.bf16 %v3769_v31, %v3737_v30  ;;  %v3689_v39 = vld [vmem:[#allocation3 + $0x88] sm:$0xff]  ;;  %v3688_v42 = vld [vmem:[#allocation3 + $0x80] sm:$0xff] }
 0x123   :  { %5291 = vmatpush1.msk.msra.mxu0 %vm125_vm1, %v2791_v8  ;;  %v2961_v44 = vpop.permute.xlu1 %2960  ;;  %5295 = vmatmul.mubr.msk.f32.vlgmr.msra.gmra.mrb[2].mxu1 %vm121_vm5, %v66_v41  ;;  %v3721_v40 = vld [vmem:[#allocation3 + $0x188] sm:$0xff]  ;;  %v3720_v43 = vld [vmem:[#allocation3 + $0x180] sm:$0xff] }
 0x124   :  { %v2959_v46 = vpop.permute.xlu0 %2958  ;;  %5292 = vmatmul.mubr.msk.f32.vlgmr.msra.gmra.mrb[2].mxu0 %vm121_vm5, %v66_v41  ;;  %3132 = vmatprep.mubr.f32.mxu1 %v5630_v4  ;;  %v5389_v41 = vpack.c.bf16 %v3721_v40, %v3689_v39  ;;  %v5391_v8 = vpack.c.bf16 %v3720_v43, %v3688_v42  ;;  %v3674_v43 = vld [vmem:[#allocation3 + $0x10] sm:$0xff] }
 0x125   :  { %v2969_v47 = vsel %vm1188_vm11, %v2959_v46, %v2961_v44  ;;  %3053 = vmatprep.mubr.f32.mxu0 %v5630_v4  ;;  %v3753_v44 = vld [vmem:[#allocation3 + $0x288] sm:$0xff] }
 0x126   :  { %v2977_v7 = vsel %vm5863_vm2, %v2969_v47, 0.0 }
 0x127   :  { %5296 = vmatprep.subr.msk.mxu0 %vm125_vm1, %v2977_v7  ;;  %v2967_v11 = vpop.permute.xlu1 %2966  ;;  %v3752_v7 = vld [vmem:[#allocation3 + $0x280] sm:$0xff] }
 0x128   :  { %v2965_v10 = vpop.permute.xlu0 %2964 }
 0x129   :  { %v2971_v48 = vsel %vm1188_vm11, %v2965_v10, %v2967_v11  ;;  %v3784_v11 = vld [vmem:[#allocation3 + $0x380] sm:$0xff] }
 0x12a   :  { %v2979_v49 = vsel %vm5863_vm2, %v2971_v48, 0.0  ;;  %v3691_v48 = vld [vmem:[#allocation3 + $0x98] sm:$0xff] }
 0x12b   :  { %5299 = vmatprep.subr.msk.mxu1 %vm125_vm1, %v2979_v49  ;;  %v2963_v50 = vpop.permute.xlu1 %2962  ;;  %v3723_v49 = vld [vmem:[#allocation3 + $0x198] sm:$0xff] }
 0x12c   :  { %v2970_v51 = vsel %vm1188_vm11, %v2963_v50, %v2965_v10  ;;  %v2957_v52 = vpop.permute.xlu0 %2956  ;;  %v5395_v10 = vpack.c.bf16 %v3784_v11, %v3752_v7  ;;  %v5639_v50 = vmov 1966171168   ;;  %v3771_v7 = vld [vmem:[#allocation3 + $0x318] sm:$0xff] }
 0x12d   :  { %v2978_v54 = vsel %vm5867_vm3, %v2970_v51, 0.0  ;;  %v2968_v55 = vsel %vm1188_vm11, %v2957_v52, %v2959_v46  ;;  %v3785_v46 = vld [vmem:[#allocation3 + $0x388] sm:$0xff]  ;;  %v1735_v51 = vunpack.c.l.s4 %v5639_v50  ;;  %v5397_v52 = vpack.c.bf16 %v3723_v49, %v3691_v48 }
 0x12e   :  { %v2976_v56 = vsel %vm5867_vm3, %v2968_v55, 0.0  ;;  %5300 = vmatpush1.msk.msra.mxu1 %vm125_vm1, %v2978_v54  ;;  %v5393_v47 = vpack.c.bf16 %v3785_v46, %v3753_v44  ;;  %v1738_v55 = vshrl.u32 %v72_v13, 7 }
 0x12f   :  { %5297 = vmatpush1.msk.msra.mxu0 %vm125_vm1, %v2976_v56  ;;  %v3146_v22 = vpop.permute.xlu1 %3145  ;;  %5301 = vmatmul.mubr.msk.f32.vlgmr.msra.gmra.mrb[2].mxu1 %vm121_vm5, %v67_v53  ;;  %v1736_v54 = vunpack.c.0.s8 %v1735_v51  ;;  %v3738_v51 = vld [vmem:[#allocation3 + $0x210] sm:$0xff] }
 0x130   :  { %v3144_v9 = vpop.permute.xlu0 %3143  ;;  %5298 = vmatmul.mubr.msk.f32.vlgmr.msra.gmra.mrb[2].mxu0 %vm121_vm5, %v67_v53  ;;  %3305 = vmatprep.mubr.f32.mxu1 %v5630_v4 }
 0x131   :  { %v3148_v57 = vsel %vm1368_vm12, %v3144_v9, %v3146_v22  ;;  %3220 = vmatprep.mubr.f32.mxu0 %v5630_v4 }
 0x132   :  { %5302 = vmatprep.subr.msk.mxu0 %vm125_vm1, %v3148_v57 }
 0x133   :  { %v3234_v25 = vpop.permute.xlu1 %3233 }
 0x134   :  { %v3232_v58 = vpop.permute.xlu0 %3231 }
 0x135   :  { %v3236_v59 = vsel %vm1368_vm12, %v3232_v58, %v3234_v25 }
 0x136   :  { %5305 = vmatprep.subr.msk.mxu1 %vm125_vm1, %v3236_v59 }
 0x137   :  { %v3230_v12 = vpop.permute.xlu1 %3229 }
 0x138   :  { %v3235_v61 = vsel %vm1368_vm12, %v3230_v12, %v3232_v58  ;;  %v3142_v62 = vpop.permute.xlu0 %3141 }
 0x139   :  { %v3147_v63 = vsel %vm1368_vm12, %v3142_v62, %v3144_v9  ;;  %5306 = vmatpush1.msk.msra.mxu1 %vm125_vm1, %v3235_v61  ;;  %v6318_v62 = vsub.s32 %v1736_v54, %v1738_v55  ;;  %v3709_v54 = vld [vmem:[#allocation3 + $0x128] sm:$0xff] }
 0x13a   :  { %5303 = vmatpush1.msk.msra.mxu0 %vm125_vm1, %v3147_v63  ;;  %5307 = vmatmul.mubr.msk.f32.vlgmr.msra.gmra.mrb[2].mxu1 %vm121_vm5, %v68_v60 }
 0x13b   :  { %v3319_v0 = vpop.permute.xlu1 %3318  ;;  %5304 = vmatmul.mubr.msk.f32.vlgmr.msra.gmra.mrb[2].mxu0 %vm121_vm5, %v68_v60  ;;  %3490 = vmatprep.mubr.f32.mxu1 %v5630_v4 }
 0x13c   :  { %v3317_v1 = vpop.permute.xlu0 %3316  ;;  %3411 = vmatprep.mubr.f32.mxu0 %v5630_v4 }
 0x13d   :  { %v3327_v2 = vsel %vm1548_vm13, %v3317_v1, %v3319_v0 }
 0x13e   :  { %v3335_v3 = vsel %vm5887_vm6, %v3327_v2, 0.0 }
 0x13f   :  { %5308 = vmatprep.subr.msk.mxu0 %vm125_vm1, %v3335_v3  ;;  %v3325_v5 = vpop.permute.xlu1 %3324 }
 0x140   :  { %v3323_v6 = vpop.permute.xlu0 %3322 }
 0x141   :  { %v3329_v14 = vsel %vm1548_vm13, %v3323_v6, %v3325_v5 }
 0x142   :  { %v3337_v15 = vsel %vm5887_vm6, %v3329_v14, 0.0 }
 0x143   :  { %5311 = vmatprep.subr.msk.mxu1 %vm125_vm1, %v3337_v15  ;;  %v3321_v18 = vpop.permute.xlu1 %3320 }
 0x144   :  { %v3328_v19 = vsel %vm1548_vm13, %v3321_v18, %v3323_v6  ;;  %v3315_v20 = vpop.permute.xlu0 %3314  ;;  %v5640_v18 = vmov 1983009808  }
 0x145   :  { %v3336_v24 = vsel %vm5929_vm7, %v3328_v19, 0.0  ;;  %v3326_v26 = vsel %vm1548_vm13, %v3315_v20, %v3317_v1  ;;  %v3817_v19 = vunpack.c.l.s4 %v5640_v18  ;;  %v3743_v18 = vld [vmem:[#allocation3 + $0x238] sm:$0xff] }
 0x146   :  { %v3334_v32 = vsel %vm5929_vm7, %v3326_v26, 0.0  ;;  %5312 = vmatpush1.msk.msra.mxu1 %vm125_vm1, %v3336_v24 }
 0x147   :  { %5309 = vmatpush1.msk.msra.mxu0 %vm125_vm1, %v3334_v32  ;;  %5313 = vmatmul.mubr.msk.f32.vlgmr.msra.gmra.mrb[2].mxu1 %vm121_vm5, %v69_v21  ;;  %vm5189_vm1 = vcmask 9216  }
 0x148   :  { %5310 = vmatmul.mubr.msk.f32.vlgmr.msra.gmra.mrb[2].mxu0 %vm121_vm5, %v69_v21  ;;  %5326 = vmatprep.subr.bf16.mxu1 %v5325_v23 }
 0x149   :  { %5390 = vmatprep.subr.bf16.mxu0 %v5389_v41 }
 0x14d   :  { %5328 = vmatpush1.bf16.xpose.msra.mxu1 %v5327_v29 }
 0x14e   :  { %5330 = vmatprep.subr.bf16.mxu1 %v5329_v33  ;;  %5392 = vmatpush1.bf16.xpose.msra.mxu0 %v5391_v8  ;;  %v3706_v8 = vld [vmem:[#allocation3 + $0x110] sm:$0xff] }
 0x14f   :  { %5394 = vmatprep.subr.bf16.mxu0 %v5393_v47  ;;  %v3739_v47 = vld [vmem:[#allocation3 + $0x218] sm:$0xff] }
 0x150   :  { %v5337_v49 = vpack.c.bf16 %v3771_v7, %v3739_v47  ;;  %v3714_v47 = vld [vmem:[#allocation3 + $0x150] sm:$0xff] }
 0x155   :  { %5332 = vmatpush1.bf16.xpose.msra.mxu1 %v5331_v35  ;;  %v1725_v53 = vpop.permute.xlu0 %1724 }
 0x156   :  { %5334 = vmatprep.subr.bf16.mxu1 %v5333_v38  ;;  %5396 = vmatpush1.bf16.xpose.msra.mxu0 %v5395_v10  ;;  %v3818_v38 = vunpack.c.0.s8 %v3817_v19  ;;  %v5335_v10 = vpack.c.bf16 %v3706_v8, %v3674_v43  ;;  %v3775_v19 = vld [vmem:[#allocation3 + $0x338] sm:$0xff] }
 0x157   :  { %5398 = vmatprep.subr.bf16.mxu0 %v5397_v52  ;;  %v3770_v52 = vld [vmem:[#allocation3 + $0x310] sm:$0xff] }
 0x158   :  { %v6369_v41 = vsub.s32 %v3818_v38, %v1738_v55  ;;  %v5339_v55 = vpack.c.bf16 %v3770_v52, %v3738_v51  ;;  %v3744_v38 = vld [vmem:[#allocation3 + $0x240] sm:$0xff]  ;;  %v3502_v51 = vpop.permute.xlu1 %3501  ;;  %v3746_v52 = vld [vmem:[#allocation3 + $0x250] sm:$0xff] }
 0x1ba   :  { %v1715_v56 = vpop.f32.mrb[0].mxu1  ;;  %v1636_v22 = vpop.f32.mrb[0].mxu0 }
 0x1bb   :  { %v1810_v9 = vadd.f32 %v1725_v53, %v1715_v56  ;;  %v1727_v57 = vadd.f32 %v1725_v53, %v1636_v22  ;;  %v1638_v25 = vpop.f32.mrb[1].mxu0  ;;  %v1717_v58 = vpop.f32.mrb[1].mxu1 }
 0x1bc   :  { %v1728_v59 = vadd.f32 %v1725_v53, %v1638_v25  ;;  %v1811_v12 = vadd.f32 %v1725_v53, %v1717_v58  ;;  %v3677_v53 = vld [vmem:[#allocation3 + $0x28] sm:$0xff] }
 0x1bd   :  { %v1812_v60 = vmax.f32 %v1810_v9, 0.0  ;;  %v1729_v61 = vmax.f32 %v1727_v57, 0.0  ;;  %v5341_v56 = vpack.c.bf16 %v3709_v54, %v3677_v53  ;;  %v3676_v9 = vld [vmem:[#allocation3 + $0x20] sm:$0xff]  ;;  %v3741_v58 = vld [vmem:[#allocation3 + $0x228] sm:$0xff]  ;;  %v3778_v53 = vld [vmem:[#allocation3 + $0x350] sm:$0xff] }
 0x1be   :  { %v1730_v63 = vmax.f32 %v1728_v59, 0.0  ;;  %v1813_v0 = vmax.f32 %v1811_v12, 0.0  ;;  %v3708_v57 = vld [vmem:[#allocation3 + $0x120] sm:$0xff]  ;;  %v3773_v59 = vld [vmem:[#allocation3 + $0x328] sm:$0xff] }
 0x1bf   :  { %v5343_v12 = vpack.c.bf16 %v3708_v57, %v3676_v9  ;;  %v3685_v54 = vld [vmem:[#allocation3 + $0x68] sm:$0xff] }
 0x1c0   :  { %v1733_v1 = vcombine.low %v1729_v61, %v1730_v63  ;;  %v1773_v2 = vcombine.high %v1729_v61, %v1730_v63  ;;  %v1816_v3 = vcombine.low %v1812_v60, %v1813_v0  ;;  %v1853_v5 = vcombine.high %v1812_v60, %v1813_v0  ;;  %v3740_v63 = vld [vmem:[#allocation3 + $0x220] sm:$0xff] }
 0x1c1   :  { %v5345_v60 = vpack.c.bf16 %v3773_v59, %v3741_v58  ;;  %v3772_v0 = vld [vmem:[#allocation3 + $0x320] sm:$0xff] }
 0x1c2   :  { %v1740_v6 = vrot.slane %v1733_v1, %v6318_v62  ;;  %v1780_v14 = vrot.slane %v1773_v2, %v6318_v62  ;;  %v1823_v15 = vrot.slane %v1816_v3, %v6318_v62  ;;  %v1860_v16 = vrot.slane %v1853_v5, %v6318_v62  ;;  %v3679_v1 = vld [vmem:[#allocation3 + $0x38] sm:$0xff] }
 0x1c3   :  { %v3711_v2 = vld [vmem:[#allocation3 + $0x138] sm:$0xff]  ;;  %v5347_v3 = vpack.c.bf16 %v3772_v0, %v3740_v63 }
 0x1c4   :  { %v1747_v20 = vrot.slane %v1740_v6, %v6318_v62  ;;  %v1754_v21 = vcombine.high %v1740_v6, %v1740_v6  ;;  %v1787_v23 = vrot.slane %v1780_v14, %v6318_v62  ;;  %v1791_v24 = vcombine.high %v1780_v14, %v1780_v14  ;;  %v3678_v14 = vld [vmem:[#allocation3 + $0x30] sm:$0xff] }
 0x1c5   :  { %v1830_v26 = vrot.slane %v1823_v15, %v6318_v62  ;;  %v1834_v32 = vcombine.high %v1823_v15, %v1823_v15  ;;  %v1867_v27 = vrot.slane %v1860_v16, %v6318_v62  ;;  %v1871_v28 = vcombine.high %v1860_v16, %v1860_v16  ;;  %v3710_v15 = vld [vmem:[#allocation3 + $0x130] sm:$0xff] }
 0x1c6   :  { %1753 = vst.msk [vmem:[#allocation2] ss:$2 sm:$0x3] %vm6325_vm14, %v1747_v20  ;;  %v1761_v13 = vrot.slane %v1754_v21, %v6318_v62  ;;  %v1765_v29 = vcombine.high %v1747_v20, %v1747_v20  ;;  %1790 = vst.msk [vmem:[#allocation2 + $0x10] ss:$2 sm:$0x3] %vm6325_vm14, %v1787_v23  ;;  %v1798_v30 = vrot.slane %v1791_v24, %v6318_v62 }
 0x1c7   :  { %v1802_v31 = vcombine.high %v1787_v23, %v1787_v23  ;;  %1833 = vst.msk [vmem:[#allocation2 + $0x1] ss:$2 sm:$0x3] %vm6325_vm14, %v1830_v26  ;;  %v1841_v33 = vrot.slane %v1834_v32, %v6318_v62  ;;  %v1845_v34 = vcombine.high %v1830_v26, %v1830_v26  ;;  %1870 = vst.msk [vmem:[#allocation2 + $0x11] ss:$2 sm:$0x3] %vm6325_vm14, %v1867_v27 }
 0x1c8   :  { %v1878_v45 = vrot.slane %v1871_v28, %v6318_v62  ;;  %v1882_v35 = vcombine.high %v1867_v27, %v1867_v27  ;;  %1764 = vst.msk [vmem:[#allocation2 + $0x4] ss:$2 sm:$0x3] %vm6325_vm14, %v1761_v13  ;;  %1768 = vst.msk [vmem:[#allocation2 + $0x8] ss:$2 sm:$0x3] %vm6325_vm14, %v1765_v29  ;;  %v1769_v36 = vcombine.high %v1761_v13, %v1761_v13 }
 0x1c9   :  { %1801 = vst.msk [vmem:[#allocation2 + $0x14] ss:$2 sm:$0x3] %vm6325_vm14, %v1798_v30  ;;  %1805 = vst.msk [vmem:[#allocation2 + $0x18] ss:$2 sm:$0x3] %vm6325_vm14, %v1802_v31  ;;  %v1806_v37 = vcombine.high %v1798_v30, %v1798_v30  ;;  %v1849_v39 = vcombine.high %v1841_v33, %v1841_v33  ;;  %v5349_v5 = vpack.c.bf16 %v3711_v2, %v3679_v1 }
 0x1ca   :  { %1844 = vst.msk [vmem:[#allocation2 + $0x5] ss:$2 sm:$0x3] %vm6325_vm14, %v1841_v33  ;;  %1848 = vst.msk [vmem:[#allocation2 + $0x9] ss:$2 sm:$0x3] %vm6325_vm14, %v1845_v34  ;;  %v1886_v40 = vcombine.high %v1878_v45, %v1878_v45  ;;  %v5351_v20 = vpack.c.bf16 %v3710_v15, %v3678_v14  ;;  %v5353_v21 = vpack.c.bf16 %v3775_v19, %v3743_v18 }
 0x1cb   :  { %1881 = vst.msk [vmem:[#allocation2 + $0x15] ss:$2 sm:$0x3] %vm6325_vm14, %v1878_v45  ;;  %1885 = vst.msk [vmem:[#allocation2 + $0x19] ss:$2 sm:$0x3] %vm6325_vm14, %v1882_v35 }
 0x1cc   :  { %1772 = vst.msk [vmem:[#allocation2 + $0xc] ss:$2 sm:$0x3] %vm6325_vm14, %v1769_v36  ;;  %1809 = vst.msk [vmem:[#allocation2 + $0x1c] ss:$2 sm:$0x3] %vm6325_vm14, %v1806_v37 }
 0x1cd   :  { %1852 = vst.msk [vmem:[#allocation2 + $0xd] ss:$2 sm:$0x3] %vm6325_vm14, %v1849_v39  ;;  %1889 = vst.msk [vmem:[#allocation2 + $0x1d] ss:$2 sm:$0x3] %vm6325_vm14, %v1886_v40 }
 0x1ce   :  { %v3742_v24 = vld [vmem:[#allocation3 + $0x230] sm:$0xff]  ;;  %v3681_v32 = vld [vmem:[#allocation3 + $0x48] sm:$0xff]  ;;  %v3680_v30 = vld [vmem:[#allocation3 + $0x40] sm:$0xff] }
 0x1cf   :  { %v3774_v26 = vld [vmem:[#allocation3 + $0x330] sm:$0xff]  ;;  %v3713_v27 = vld [vmem:[#allocation3 + $0x148] sm:$0xff]  ;;  %v3712_v31 = vld [vmem:[#allocation3 + $0x140] sm:$0xff] }
 0x1d0   :  { %v5355_v28 = vpack.c.bf16 %v3774_v26, %v3742_v24  ;;  %v5357_v13 = vpack.c.bf16 %v3713_v27, %v3681_v32  ;;  %v3745_v34 = vld [vmem:[#allocation3 + $0x248] sm:$0xff]  ;;  %v5359_v35 = vpack.c.bf16 %v3712_v31, %v3680_v30  ;;  %v3776_v39 = vld [vmem:[#allocation3 + $0x340] sm:$0xff]  ;;  %v3683_v40 = vld [vmem:[#allocation3 + $0x58] sm:$0xff] }
 0x1d1   :  { %v3664_v42 = vld [vmem:[#allocation2] sm:$0xff]  ;;  %v3777_v45 = vld [vmem:[#allocation3 + $0x348] sm:$0xff]  ;;  %v5363_v43 = vpack.c.bf16 %v3776_v39, %v3744_v38 }
 0x1d2   :  { %v3822_v44 = vrot.slane %v3664_v42, %v6369_v41  ;;  %v3815_v46 = vcombine.high %v3664_v42, %v3664_v42  ;;  %v3666_v29 = vld [vmem:[#allocation2 + $0x10] sm:$0xff]  ;;  %v5361_v36 = vpack.c.bf16 %v3777_v45, %v3745_v34  ;;  %v3715_v42 = vld [vmem:[#allocation3 + $0x158] sm:$0xff]  ;;  %v3749_v18 = vld [vmem:[#allocation3 + $0x268] sm:$0xff] }
 0x1d3   :  { %v3856_v33 = vrot.slane %v3666_v29, %v6369_v41  ;;  %v5365_v8 = vpack.c.bf16 %v3715_v42, %v3683_v40  ;;  %v3781_v19 = vld [vmem:[#allocation3 + $0x368] sm:$0xff] }
 0x1d4   :  { %v3830_v11 = vcombine.high %v3822_v44, %v3822_v44  ;;  %v3829_v48 = vrot.slane %v3815_v46, %v6369_v41  ;;  %v3665_v22 = vld [vmem:[#allocation2 + $0x8] sm:$0xff]  ;;  %v3682_v46 = vld [vmem:[#allocation3 + $0x50] sm:$0xff] }
 0x1d5   :  { %v3839_v25 = vrot.slane %v3665_v22, %v6369_v41  ;;  %v3832_v6 = vcombine.high %v3665_v22, %v3665_v22  ;;  %v3864_v37 = vcombine.high %v3856_v33, %v3856_v33 }
 0x1d6   :  { %4047 = vmatprep.mubr.f32.mxu1 %v3830_v11  ;;  %v3831_v50 = vcombine.high %v3829_v48, %v3829_v48  ;;  %v3747_v11 = vld [vmem:[#allocation3 + $0x258] sm:$0xff] }
 0x1d7   :  { %4048 = vmatmul.mubr.f32.vlgmr.msra.gmra.mrb[4].mxu1 %v3822_v44  ;;  %v3847_v61 = vcombine.high %v3839_v25, %v3839_v25  ;;  %v3846_v16 = vrot.slane %v3832_v6, %v6369_v41  ;;  %v3849_v44 = vcombine.high %v3666_v29, %v3666_v29  ;;  %v3716_v6 = vld [vmem:[#allocation3 + $0x160] sm:$0xff] }
 0x1d8   :  { %5336 = vmatpush1.bf16.xpose.msra.mxu1 %v5335_v10  ;;  %4117 = vmatprep.mubr.f32.mxu1 %v3831_v50  ;;  %v3779_v10 = vld [vmem:[#allocation3 + $0x358] sm:$0xff] }
 0x1d9   :  { %5338 = vmatprep.subr.bf16.mxu1 %v5337_v49  ;;  %v3848_v23 = vcombine.high %v3846_v16, %v3846_v16  ;;  %v3863_v7 = vrot.slane %v3849_v44, %v6369_v41  ;;  %v5369_v49 = vpack.c.bf16 %v3779_v10, %v3747_v11 }
 0x1db   :  { %v3865_v50 = vcombine.high %v3863_v7, %v3863_v7 }
 0x1e0   :  { %5340 = vmatpush1.bf16.xpose.msra.mxu1 %v5339_v55  ;;  %v3717_v55 = vld [vmem:[#allocation3 + $0x168] sm:$0xff] }
 0x1e1   :  { %5342 = vmatprep.subr.bf16.mxu1 %v5341_v56 }
 0x1e7   :  { %4118 = vmatmul.mubr.f32.vlgmr.msra.gmra.mrb[4].mxu1 %v3829_v48  ;;  %v5367_v48 = vpack.c.bf16 %v3714_v47, %v3682_v46 }
 0x1e8   :  { %5344 = vmatpush1.bf16.xpose.msra.mxu1 %v5343_v12  ;;  %4187 = vmatprep.mubr.f32.mxu1 %v3847_v61  ;;  %v6377_v61 = vld [vmem:[#allocation2 + $0x18] sm:$0xff] }
 0x1e9   :  { %5346 = vmatprep.subr.bf16.mxu1 %v5345_v60  ;;  %v5373_v60 = vpack.c.bf16 %v3717_v55, %v3685_v54  ;;  %v6381_v14 = vrot.slane %v6377_v61, %v6369_v41  ;;  %v3686_v54 = vld [vmem:[#allocation3 + $0x70] sm:$0xff] }
 0x1ea   :  { %v3718_v55 = vld [vmem:[#allocation3 + $0x170] sm:$0xff] }
 0x1f0   :  { %5348 = vmatpush1.bf16.xpose.msra.mxu1 %v5347_v3 }
 0x1f1   :  { %5350 = vmatprep.subr.bf16.mxu1 %v5349_v5  ;;  %v3684_v5 = vld [vmem:[#allocation3 + $0x60] sm:$0xff] }
 0x1f2   :  { %v5375_v26 = vpack.c.bf16 %v3716_v6, %v3684_v5  ;;  %v3750_v6 = vld [vmem:[#allocation3 + $0x270] sm:$0xff] }
 0x1f7   :  { %4188 = vmatmul.mubr.f32.vlgmr.msra.gmra.mrb[4].mxu1 %v3839_v25  ;;  %v5371_v25 = vpack.c.bf16 %v3778_v53, %v3746_v52  ;;  %v3866_v52 = vcombine.high %v6377_v61, %v6377_v61 }
 0x1f8   :  { %5352 = vmatpush1.bf16.xpose.msra.mxu1 %v5351_v20  ;;  %4257 = vmatprep.mubr.f32.mxu1 %v3848_v23 }
 0x1f9   :  { %5354 = vmatprep.subr.bf16.mxu1 %v5353_v21 }
 0x200   :  { %5356 = vmatpush1.bf16.xpose.msra.mxu1 %v5355_v28  ;;  %v3881_v28 = vcombine.high %v6381_v14, %v6381_v14 }
 0x201   :  { %5358 = vmatprep.subr.bf16.mxu1 %v5357_v13  ;;  %v5377_v13 = vpack.c.bf16 %v3781_v19, %v3749_v18  ;;  %v3786_v18 = vld [vmem:[#allocation3 + $0x390] sm:$0xff]  ;;  %v3693_v19 = vld [vmem:[#allocation3 + $0xa8] sm:$0xff] }
 0x207   :  { %4258 = vmatmul.mubr.f32.vlgmr.msra.gmra.mrb[4].mxu1 %v3846_v16 }
 0x208   :  { %5360 = vmatpush1.bf16.xpose.msra.mxu1 %v5359_v35  ;;  %4327 = vmatprep.mubr.f32.mxu1 %v3864_v37 }
 0x209   :  { %5362 = vmatprep.subr.bf16.mxu1 %v5361_v36 }
 0x210   :  { %5364 = vmatpush1.bf16.xpose.msra.mxu1 %v5363_v43 }
 0x211   :  { %5366 = vmatprep.subr.bf16.mxu1 %v5365_v8 }
 0x217   :  { %4328 = vmatmul.mubr.f32.vlgmr.msra.gmra.mrb[4].mxu1 %v3856_v33 }
 0x218   :  { %5368 = vmatpush1.bf16.xpose.msra.mxu1 %v5367_v48  ;;  %4397 = vmatprep.mubr.f32.mxu1 %v3865_v50  ;;  %v3687_v48 = vld [vmem:[#allocation3 + $0x78] sm:$0xff] }
 0x219   :  { %5370 = vmatprep.subr.bf16.mxu1 %v5369_v49  ;;  %v3719_v49 = vld [vmem:[#allocation3 + $0x178] sm:$0xff] }
 0x21a   :  { %v3492_v56 = vpop.f32.mrb[2].mxu1 }
 0x21b   :  { %v3413_v22 = vpop.f32.mrb[2].mxu0  ;;  %v3584_v9 = vadd.f32 %v3502_v51, %v3492_v56  ;;  %v3494_v57 = vpop.f32.mrb[3].mxu1 }
 0x21c   :  { %v3504_v58 = vadd.f32 %v3502_v51, %v3413_v22  ;;  %v3415_v59 = vpop.f32.mrb[3].mxu0  ;;  %v3585_v12 = vadd.f32 %v3502_v51, %v3494_v57  ;;  %v3880_v22 = vrot.slane %v3866_v52, %v6369_v41  ;;  %v3722_v57 = vld [vmem:[#allocation3 + $0x190] sm:$0xff]  ;;  %v3728_v52 = vld [vmem:[#allocation3 + $0x1c0] sm:$0xff] }
 0x21d   :  { %v3586_v63 = vmax.f32 %v3584_v9, 0.0  ;;  %v3505_v0 = vadd.f32 %v3502_v51, %v3415_v59  ;;  %v5381_v51 = vpack.c.bf16 %v3719_v49, %v3687_v48  ;;  %v3690_v9 = vld [vmem:[#allocation3 + $0x90] sm:$0xff]  ;;  %v3755_v59 = vld [vmem:[#allocation3 + $0x298] sm:$0xff] }
 0x21e   :  { %v3506_v1 = vmax.f32 %v3504_v58, 0.0  ;;  %v3587_v2 = vmax.f32 %v3585_v12, 0.0  ;;  %v3751_v58 = vld [vmem:[#allocation3 + $0x278] sm:$0xff] }
 0x21f   :  { %v3507_v3 = vmax.f32 %v3505_v0, 0.0  ;;  %v3787_v12 = vld [vmem:[#allocation3 + $0x398] sm:$0xff]  ;;  %v5399_v0 = vpack.c.bf16 %v3722_v57, %v3690_v9  ;;  %v3760_v57 = vld [vmem:[#allocation3 + $0x2c0] sm:$0xff] }
 0x220   :  { %5372 = vmatpush1.bf16.xpose.msra.mxu1 %v5371_v25  ;;  %v3590_v15 = vcombine.low %v3586_v63, %v3587_v2  ;;  %v3627_v16 = vcombine.high %v3586_v63, %v3587_v2  ;;  %v5383_v63 = vpack.c.bf16 %v3718_v55, %v3686_v54  ;;  %v5401_v5 = vpack.c.bf16 %v3787_v12, %v3755_v59  ;;  %v3761_v54 = vld [vmem:[#allocation3 + $0x2c8] sm:$0xff] }
 0x221   :  { %5374 = vmatprep.subr.bf16.mxu1 %v5373_v60  ;;  %v3510_v20 = vcombine.low %v3506_v1, %v3507_v3  ;;  %v3547_v21 = vcombine.high %v3506_v1, %v3507_v3  ;;  %v3882_v1 = vcombine.high %v3880_v22, %v3880_v22  ;;  %v5385_v3 = vpack.c.bf16 %v3783_v17, %v3751_v58  ;;  %v3793_v55 = vld [vmem:[#allocation3 + $0x3c8] sm:$0xff]  ;;  %v3699_v58 = vld [vmem:[#allocation3 + $0xd8] sm:$0xff] }
 0x222   :  { %v3597_v23 = vrot.slane %v3590_v15, %v6318_v62  ;;  %v3634_v24 = vrot.slane %v3627_v16, %v6318_v62  ;;  %v3782_v15 = vld [vmem:[#allocation3 + $0x370] sm:$0xff]  ;;  %v3731_v17 = vld [vmem:[#allocation3 + $0x1d8] sm:$0xff] }
 0x223   :  { %v3517_v32 = vrot.slane %v3510_v20, %v6318_v62  ;;  %v3554_v27 = vrot.slane %v3547_v21, %v6318_v62  ;;  %v3754_v16 = vld [vmem:[#allocation3 + $0x290] sm:$0xff]  ;;  %v3725_v20 = vld [vmem:[#allocation3 + $0x1a8] sm:$0xff]  ;;  %v5387_v21 = vpack.c.bf16 %v3782_v15, %v3750_v6  ;;  %v5429_v12 = vpack.c.bf16 %v3731_v17, %v3699_v58 }
 0x224   :  { %v3604_v29 = vrot.slane %v3597_v23, %v6318_v62  ;;  %v3608_v30 = vcombine.high %v3597_v23, %v3597_v23  ;;  %v3641_v31 = vrot.slane %v3634_v24, %v6318_v62  ;;  %v3645_v33 = vcombine.high %v3634_v24, %v3634_v24  ;;  %v3762_v15 = vld [vmem:[#allocation3 + $0x2d0] sm:$0xff] }
 0x225   :  { %v3524_v34 = vrot.slane %v3517_v32, %v6318_v62  ;;  %v3528_v45 = vcombine.high %v3517_v32, %v3517_v32  ;;  %v3561_v35 = vrot.slane %v3554_v27, %v6318_v62  ;;  %v3565_v36 = vcombine.high %v3554_v27, %v3554_v27  ;;  %v3724_v32 = vld [vmem:[#allocation3 + $0x1a0] sm:$0xff] }
 0x226   :  { %3607 = vst.msk [vmem:[#allocation2 + $0x21] ss:$2 sm:$0x3] %vm6325_vm14, %v3604_v29  ;;  %v3615_v37 = vrot.slane %v3608_v30, %v6318_v62  ;;  %v3619_v38 = vcombine.high %v3604_v29, %v3604_v29  ;;  %3644 = vst.msk [vmem:[#allocation2 + $0x31] ss:$2 sm:$0x3] %vm6325_vm14, %v3641_v31  ;;  %v3652_v39 = vrot.slane %v3645_v33, %v6318_v62 }
 0x227   :  { %v3656_v40 = vcombine.high %v3641_v31, %v3641_v31  ;;  %4398 = vmatmul.mubr.f32.vlgmr.msra.gmra.mrb[4].mxu1 %v3863_v7  ;;  %3527 = vst.msk [vmem:[#allocation2 + $0x20] ss:$2 sm:$0x3] %vm6325_vm14, %v3524_v34  ;;  %v3535_v42 = vrot.slane %v3528_v45, %v6318_v62  ;;  %v3539_v43 = vcombine.high %v3524_v34, %v3524_v34  ;;  %3564 = vst.msk [vmem:[#allocation2 + $0x30] ss:$2 sm:$0x3] %vm6325_vm14, %v3561_v35 }
 0x228   :  { %v3572_v8 = vrot.slane %v3565_v36, %v6318_v62  ;;  %v3576_v44 = vcombine.high %v3561_v35, %v3561_v35  ;;  %5376 = vmatpush1.bf16.xpose.msra.mxu1 %v5375_v26  ;;  %3618 = vst.msk [vmem:[#allocation2 + $0x25] ss:$2 sm:$0x3] %vm6325_vm14, %v3615_v37  ;;  %3622 = vst.msk [vmem:[#allocation2 + $0x29] ss:$2 sm:$0x3] %vm6325_vm14, %v3619_v38  ;;  %v3623_v46 = vcombine.high %v3615_v37, %v3615_v37 }
 0x229   :  { %3655 = vst.msk [vmem:[#allocation2 + $0x35] ss:$2 sm:$0x3] %vm6325_vm14, %v3652_v39  ;;  %3659 = vst.msk [vmem:[#allocation2 + $0x39] ss:$2 sm:$0x3] %vm6325_vm14, %v3656_v40  ;;  %v3660_v47 = vcombine.high %v3652_v39, %v3652_v39  ;;  %4467 = vmatprep.mubr.f32.mxu1 %v3881_v28  ;;  %5378 = vmatprep.subr.bf16.mxu1 %v5377_v13  ;;  %v3543_v11 = vcombine.high %v3535_v42, %v3535_v42 }
 0x22a   :  { %v3748_v7 = vld [vmem:[#allocation3 + $0x260] sm:$0xff]  ;;  %3538 = vst.msk [vmem:[#allocation2 + $0x24] ss:$2 sm:$0x3] %vm6325_vm14, %v3535_v42  ;;  %v3580_v10 = vcombine.high %v3572_v8, %v3572_v8  ;;  %v5403_v23 = vpack.c.bf16 %v3786_v18, %v3754_v16  ;;  %v5405_v24 = vpack.c.bf16 %v3725_v20, %v3693_v19  ;;  %v3757_v28 = vld [vmem:[#allocation3 + $0x2a8] sm:$0xff]  ;;  %v3695_v45 = vld [vmem:[#allocation3 + $0xb8] sm:$0xff] }
 0x22b   :  { %v3780_v62 = vld [vmem:[#allocation3 + $0x360] sm:$0xff]  ;;  %3542 = vst.msk [vmem:[#allocation2 + $0x28] ss:$2 sm:$0x3] %vm6325_vm14, %v3539_v43  ;;  %v3789_v13 = vld [vmem:[#allocation3 + $0x3a8] sm:$0xff]  ;;  %v3727_v35 = vld [vmem:[#allocation3 + $0x1b8] sm:$0xff] }
 0x22c   :  { %3575 = vst.msk [vmem:[#allocation2 + $0x34] ss:$2 sm:$0x3] %vm6325_vm14, %v3572_v8  ;;  %3579 = vst.msk [vmem:[#allocation2 + $0x38] ss:$2 sm:$0x3] %vm6325_vm14, %v3576_v44  ;;  %v5379_v50 = vpack.c.bf16 %v3780_v62, %v3748_v7  ;;  %v5409_v30 = vpack.c.bf16 %v3789_v13, %v3757_v28  ;;  %v5413_v37 = vpack.c.bf16 %v3727_v35, %v3695_v45 }
 0x22d   :  { %3626 = vst.msk [vmem:[#allocation2 + $0x2d] ss:$2 sm:$0x3] %vm6325_vm14, %v3623_v46  ;;  %3663 = vst.msk [vmem:[#allocation2 + $0x3d] ss:$2 sm:$0x3] %vm6325_vm14, %v3660_v47 }
 0x22e   :  { %3546 = vst.msk [vmem:[#allocation2 + $0x2c] ss:$2 sm:$0x3] %vm6325_vm14, %v3543_v11  ;;  %3583 = vst.msk [vmem:[#allocation2 + $0x3c] ss:$2 sm:$0x3] %vm6325_vm14, %v3580_v10 }
 0x22f   :  { %v3756_v33 = vld [vmem:[#allocation3 + $0x2a0] sm:$0xff]  ;;  %v3694_v39 = vld [vmem:[#allocation3 + $0xb0] sm:$0xff]  ;;  %v3759_v43 = vld [vmem:[#allocation3 + $0x2b8] sm:$0xff] }
 0x230   :  { %5380 = vmatpush1.bf16.xpose.msra.mxu1 %v5379_v50  ;;  %v3788_v34 = vld [vmem:[#allocation3 + $0x3a0] sm:$0xff]  ;;  %v3726_v40 = vld [vmem:[#allocation3 + $0x1b0] sm:$0xff]  ;;  %v3791_v8 = vld [vmem:[#allocation3 + $0x3b8] sm:$0xff] }
 0x231   :  { %5382 = vmatprep.subr.bf16.mxu1 %v5381_v51  ;;  %v3668_v53 = vld [vmem:[#allocation2 + $0x20] sm:$0xff]  ;;  %v5411_v36 = vpack.c.bf16 %v3788_v34, %v3756_v33  ;;  %v5415_v44 = vpack.c.bf16 %v3726_v40, %v3694_v39  ;;  %v5417_v46 = vpack.c.bf16 %v3791_v8, %v3759_v43  ;;  %v3758_v7 = vld [vmem:[#allocation3 + $0x2b0] sm:$0xff]  ;;  %v3697_v11 = vld [vmem:[#allocation3 + $0xc8] sm:$0xff] }
 0x232   :  { %v3890_v56 = vrot.slane %v3668_v53, %v6369_v41  ;;  %v3883_v25 = vcombine.high %v3668_v53, %v3668_v53  ;;  %v3790_v62 = vld [vmem:[#allocation3 + $0x3b0] sm:$0xff]  ;;  %v3729_v10 = vld [vmem:[#allocation3 + $0x1c8] sm:$0xff]  ;;  %v3696_v51 = vld [vmem:[#allocation3 + $0xc0] sm:$0xff] }
 0x233   :  { %v5419_v48 = vpack.c.bf16 %v3790_v62, %v3758_v7  ;;  %v5421_v49 = vpack.c.bf16 %v3729_v10, %v3697_v11  ;;  %v3670_v50 = vld [vmem:[#allocation2 + $0x30] sm:$0xff]  ;;  %v3701_v18 = vld [vmem:[#allocation3 + $0xe8] sm:$0xff]  ;;  %v3703_v33 = vld [vmem:[#allocation3 + $0xf8] sm:$0xff] }
 0x234   :  { %v3898_v60 = vcombine.high %v3890_v56, %v3890_v56  ;;  %v3897_v61 = vrot.slane %v3883_v25, %v6369_v41  ;;  %v3924_v53 = vrot.slane %v3670_v50, %v6369_v41  ;;  %v3792_v25 = vld [vmem:[#allocation3 + $0x3c0] sm:$0xff]  ;;  %v3794_v16 = vld [vmem:[#allocation3 + $0x3d0] sm:$0xff]  ;;  %v3733_v19 = vld [vmem:[#allocation3 + $0x1e8] sm:$0xff] }
 0x235   :  { %v3669_v26 = vld [vmem:[#allocation2 + $0x28] sm:$0xff]  ;;  %v5427_v59 = vpack.c.bf16 %v3792_v25, %v3760_v57  ;;  %v5435_v20 = vpack.c.bf16 %v3794_v16, %v3762_v15  ;;  %v3735_v34 = vld [vmem:[#allocation3 + $0x1f8] sm:$0xff] }
 0x236   :  { %4607 = vmatprep.mubr.f32.mxu0 %v3898_v60  ;;  %v3899_v2 = vcombine.high %v3897_v61, %v3897_v61  ;;  %v3907_v27 = vrot.slane %v3669_v26, %v6369_v41  ;;  %v3900_v38 = vcombine.high %v3669_v26, %v3669_v26  ;;  %v3932_v9 = vcombine.high %v3924_v53, %v3924_v53  ;;  %v3732_v26 = vld [vmem:[#allocation3 + $0x1e0] sm:$0xff]  ;;  %v3767_v40 = vld [vmem:[#allocation3 + $0x2f8] sm:$0xff] }
 0x237   :  { %4468 = vmatmul.mubr.f32.vlgmr.msra.gmra.mrb[4].mxu1 %v6381_v14  ;;  %4608 = vmatmul.mubr.f32.vlgmr.msra.gmra.mrb[4].mxu0 %v3890_v56  ;;  %v3692_v14 = vld [vmem:[#allocation3 + $0xa0] sm:$0xff]  ;;  %v5423_v56 = vpack.c.bf16 %v3728_v52, %v3696_v51  ;;  %v3917_v60 = vcombine.high %v3670_v50, %v3670_v50  ;;  %v5445_v35 = vpack.c.bf16 %v3735_v34, %v3703_v33  ;;  %v5104_v62 = vld [vmem:[%s6470_s6] sm:$0x3]  ;;  %s5642_s6 = smov [#allocation6]  }
 0x238   :  { %5384 = vmatpush1.bf16.xpose.msra.mxu1 %v5383_v63  ;;  %4537 = vmatprep.mubr.f32.mxu1 %v3882_v1  ;;  %v5407_v29 = vpack.c.bf16 %v3724_v32, %v3692_v14  ;;  %v3915_v31 = vcombine.high %v3907_v27, %v3907_v27  ;;  %v3914_v42 = vrot.slane %v3900_v38, %v6369_v41  ;;  %v3698_v63 = vld [vmem:[#allocation3 + $0xd0] sm:$0xff]  ;;  %v3763_v1 = vld [vmem:[#allocation3 + $0x2d8] sm:$0xff]  ;;  %v3765_v32 = vld [vmem:[#allocation3 + $0x2e8] sm:$0xff]  ;;  %s5197_s13 = sshll.u32 %s5642_s6, 4  ;;  %s5198_s13 = int_to_ptr.vmem [resolvable:$true] %s5197_s13 }
 0x239   :  { %5400 = vmatpush1.bf16.xpose.msra.mxu0 %v5399_v0  ;;  %4677 = vmatprep.mubr.f32.mxu0 %v3899_v2  ;;  %v3931_v0 = vrot.slane %v3917_v60, %v6369_v41  ;;  %v3795_v2 = vld [vmem:[#allocation3 + $0x3d8] sm:$0xff]  ;;  %v3734_v38 = vld [vmem:[#allocation3 + $0x1f0] sm:$0xff]  ;;  %s5600_s3 = scalar_lea.vmem %s5198_s13, 32  ;;  %p5605_p9 = scmp.lt.s32.totalorder %s5198_s13, %s5198_s13 }
 0x23a   :  { %5386 = vmatprep.subr.bf16.mxu1 %v5385_v3  ;;  %5402 = vmatprep.subr.bf16.mxu0 %v5401_v5  ;;  %v3916_v47 = vcombine.high %v3914_v42, %v3914_v42  ;;  %v5433_v5 = vpack.c.bf16 %v3795_v2, %v3763_v1  ;;  %v5314_v10 = vld [vmem:[%s6469_s5] ss:$0 sm:$0xff]  ;;  %p5601_p8 = scmp.ne.s32.totalorder %s5198_s13, %s5600_s3  ;;  %p5606_p10 = scmp.lt.s32.totalorder %s5600_s3, %s5600_s3 }
 0x23b   :  { %v3933_v6 = vcombine.high %v3931_v0, %v3931_v0 }
 0x23c   :  { %p5607_p11 = por %p5606_p10, %p5605_p9 }
 0x23e   :  { %p5608_p12 = pnand %p5607_p11, %p5601_p8 }
 0x240   :  { %5388 = vmatpush1.bf16.xpose.msra.mxu1 %v5387_v21  ;;  %v5437_v21 = vpack.c.bf16 %v3733_v19, %v3701_v18 }
 0x241   :  { %5404 = vmatpush1.bf16.xpose.msra.mxu0 %v5403_v23  ;;  %5320 = vmatprep.subr.mxu1 %v5630_v4  ;;  %v3671_v23 = vld [vmem:[#allocation2 + $0x38] sm:$0xff] }
 0x242   :  { %5406 = vmatprep.subr.bf16.mxu0 %v5405_v24  ;;  %v3700_v24 = vld [vmem:[#allocation3 + $0xe0] sm:$0xff]  ;;  %v3941_v14 = vrot.slane %v3671_v23, %v6369_v41 }
 0x243   :  { %v5439_v28 = vpack.c.bf16 %v3732_v26, %v3700_v24 }
 0x247   :  { %4538 = vmatmul.mubr.f32.vlgmr.msra.gmra.mrb[4].mxu1 %v3880_v22  ;;  %v5425_v22 = vpack.c.bf16 %v3793_v55, %v3761_v54 }
 0x248   :  { %4678 = vmatmul.mubr.f32.vlgmr.msra.gmra.mrb[4].mxu0 %v3897_v61  ;;  %v3730_v61 = vld [vmem:[#allocation3 + $0x1d0] sm:$0xff]  ;;  %5321 = vmatpush3.xpose.msk.msra.mxu1 %vm5112_vm15, %v5104_v62 }
 0x249   :  { %5408 = vmatpush1.bf16.xpose.msra.mxu0 %v5407_v29  ;;  %4747 = vmatprep.mubr.f32.mxu0 %v3915_v31  ;;  %v5431_v3 = vpack.c.bf16 %v3730_v61, %v3698_v63  ;;  %v3949_v29 = vcombine.high %v3941_v14, %v3941_v14  ;;  %v3796_v31 = vld [vmem:[#allocation3 + $0x3e0] sm:$0xff] }
 0x24a   :  { %5410 = vmatprep.subr.bf16.mxu0 %v5409_v30  ;;  %v3764_v30 = vld [vmem:[#allocation3 + $0x2e0] sm:$0xff]  ;;  %5322 = vmatprep.mubr.msk.f32.mxu1 %vm5641_vm0, %v5630_v4 }
 0x24b   :  { %v5443_v45 = vpack.c.bf16 %v3796_v31, %v3764_v30 }
 0x251   :  { %5412 = vmatpush1.bf16.xpose.msra.mxu0 %v5411_v36  ;;  %v3934_v36 = vcombine.high %v3671_v23, %v3671_v23 }
 0x252   :  { %5414 = vmatprep.subr.bf16.mxu0 %v5413_v37  ;;  %v3702_v37 = vld [vmem:[#allocation3 + $0xf0] sm:$0xff] }
 0x253   :  { %v3948_v39 = vrot.slane %v3934_v36, %v6369_v41  ;;  %v5447_v43 = vpack.c.bf16 %v3734_v38, %v3702_v37 }
 0x258   :  { %4748 = vmatmul.mubr.f32.vlgmr.msra.gmra.mrb[4].mxu0 %v3907_v27  ;;  %v3797_v27 = vld [vmem:[#allocation3 + $0x3e8] sm:$0xff] }
 0x259   :  { %5416 = vmatpush1.bf16.xpose.msra.mxu0 %v5415_v44  ;;  %4817 = vmatprep.mubr.f32.mxu0 %v3916_v47  ;;  %v5441_v13 = vpack.c.bf16 %v3797_v27, %v3765_v32  ;;  %v3950_v44 = vcombine.high %v3948_v39, %v3948_v39  ;;  %v3798_v47 = vld [vmem:[#allocation3 + $0x3f0] sm:$0xff] }
 0x25a   :  { %5418 = vmatprep.subr.bf16.mxu0 %v5417_v46  ;;  %v3766_v46 = vld [vmem:[#allocation3 + $0x2f0] sm:$0xff] }
 0x25b   :  { %v5451_v7 = vpack.c.bf16 %v3798_v47, %v3766_v46 }
 0x261   :  { %5420 = vmatpush1.bf16.xpose.msra.mxu0 %v5419_v48 }
 0x262   :  { %5422 = vmatprep.subr.bf16.mxu0 %v5421_v49 }
 0x268   :  { %4818 = vmatmul.mubr.f32.vlgmr.msra.gmra.mrb[4].mxu0 %v3914_v42  ;;  %v3799_v42 = vld [vmem:[#allocation3 + $0x3f8] sm:$0xff] }
 0x269   :  { %5424 = vmatpush1.bf16.xpose.msra.mxu0 %v5423_v56  ;;  %4887 = vmatprep.mubr.f32.mxu0 %v3932_v9  ;;  %v5449_v8 = vpack.c.bf16 %v3799_v42, %v3767_v40 }
 0x26a   :  { %5426 = vmatprep.subr.bf16.mxu0 %v5425_v22 }
 0x271   :  { %5428 = vmatpush1.bf16.xpose.msra.mxu0 %v5427_v59 }
 0x272   :  { %5430 = vmatprep.subr.bf16.mxu0 %v5429_v12 }
 0x278   :  { %4888 = vmatmul.mubr.f32.vlgmr.msra.gmra.mrb[4].mxu0 %v3924_v53  ;;  %v5315_v53 = vld [vmem:[%s6471_s7] ss:$0 sm:$0xff] }
 0x279   :  { %5432 = vmatpush1.bf16.xpose.msra.mxu0 %v5431_v3  ;;  %4957 = vmatprep.mubr.f32.mxu0 %v3933_v6 }
 0x27a   :  { %5434 = vmatprep.subr.bf16.mxu0 %v5433_v5 }
 0x281   :  { %5436 = vmatpush1.bf16.xpose.msra.mxu0 %v5435_v20 }
 0x282   :  { %5438 = vmatprep.subr.bf16.mxu0 %v5437_v21 }
 0x288   :  { %4958 = vmatmul.mubr.f32.vlgmr.msra.gmra.mrb[4].mxu0 %v3931_v0 }
 0x289   :  { %5440 = vmatpush1.bf16.xpose.msra.mxu0 %v5439_v28  ;;  %5027 = vmatprep.mubr.f32.mxu0 %v3949_v29 }
 0x28a   :  { %5442 = vmatprep.subr.bf16.mxu0 %v5441_v13 }
 0x291   :  { %5444 = vmatpush1.bf16.xpose.msra.mxu0 %v5443_v45 }
 0x292   :  { %5446 = vmatprep.subr.bf16.mxu0 %v5445_v35 }
 0x298   :  { %5028 = vmatmul.mubr.f32.vlgmr.msra.gmra.mrb[4].mxu0 %v3941_v14 }
 0x299   :  { %5448 = vmatpush1.bf16.xpose.msra.mxu0 %v5447_v43  ;;  %5097 = vmatprep.mubr.f32.mxu0 %v3950_v44 }
 0x29a   :  { %5450 = vmatprep.subr.bf16.mxu0 %v5449_v8 }
 0x2a1   :  { %5452 = vmatpush1.bf16.xpose.msra.mxu0 %v5451_v7 }
 0x2a8   :  { %5098 = vmatmul.mubr.f32.vlgmr.msra.gmra.mrb[4].mxu0 %v3948_v39 }
 0x31a   :  { %v4539_v41 = vpop.f32.mrb[4].mxu1 }
 0x31b   :  { %v4541_v11 = vpop.f32.mrb[5].mxu1  ;;  %v5453_v48 = vadd.f32 %v5314_v10, %v4539_v41 }
 0x37b   :  { %v5099_v49 = vpop.f32.mrb[4].mxu0 }
 0x37c   :  { %v5454_v50 = vadd.f32 %v5453_v48, %v5099_v49  ;;  %v5101_v51 = vpop.f32.mrb[5].mxu0 }
 0x37e   :  { %v5103_v52 = vmax.f32 %v5454_v50, 0.0 }
 0x380   :  { %5323 = vmatmul.mubr.msk.f32.vlgmr.msra.gmra.mrb[6].mxu1 %vm5112_vm15, %v5103_v52 }
 0x453   :  { %v5185_v54 = vpop.f32.mrb[6].mxu1 }
 0x454   :  { %v5186_v4 = vadd.f32 %v5315_v53, %v5185_v54  ;;  %v5324_v55 = vpop.f32.mrb[7].mxu1 }
 0x456   :  { %5190 = vst.msk [vmem:[#allocation6] sm:$0x3] %vm5189_vm1, %v5186_v4 }
 0x457   :  { %5611 = shalt.err (!%p5608_p12)
}
 0x458   :  { %s5612_s15 = scalar_lea.hbm %s6472_s8, 32 }
 0x459   :  { %p5613_p13 = scmp.ne.s32.totalorder %s6472_s8, %s5612_s15  ;;  %p5616_p0 = scmp.lt.u32.totalorder %s5612_s15, %s6472_s8 }
 0x45b   :  { %p5618_p1 = pnand %p5616_p0, %p5613_p13 }
 0x45d   :  { %5621 = shalt.err (!%p5618_p1)
}
 0x45e   :  { %5200 = dma.vmem_to_hbm [thread:$0]  %s5198_s13, 32, %s6472_s8, [#allocation5]  }
 0x45f   :  { %5624 = dma.done.wait [#allocation5], 32  }
 0x460   :  { %5625 = vsyncadd [#allocation5], 4294967264 }
 0x461   :  { %5204 = vsyncpa [#allocation4], 1 }
 0x462   :  { %5205 = vsyncpa [#allocation5], 1 }

</bundles_post_ra>
